<compile_context>
chip_gen: v5e
topology: v5e:2x2
jax: 0.10.0
libtpu: 0.0.40
codegen_flags: <defaults>
</compile_context>

<pallas_src>
import math
from functools import partial

import jax
import jax.numpy as jnp
from jax.experimental import pallas as pl
from jax.experimental.pallas import tpu as pltpu


def _round_up(n, m):
    return ((n + m - 1) // m) * m


# ----------------------------------------------------------------------------
# Pallas kernel: one batch tile (batch on lanes) of the whole DecoderRBF fwd
# ----------------------------------------------------------------------------
def _decoder_rbf_kernel(xa_ref, a1_ref, bh_ref, wh_ref, a2_ref, v2_ref,
                        wo_ref, out_ref):
    f32 = jnp.float32
    xa = xa_ref[...]                                   # (L+2, TB)  [x; x^2; 1]

    # rbf_hidden (gaussian), fully folded into one MXU dot:
    #   a1.T = exp( [2*g1*c1, -g1, k1] @ [x.T ; ||x||^2 ; 1] )
    a1 = jnp.exp(jnp.dot(a1_ref[...], xa, preferred_element_type=f32))  # (H, TB)

    # fc_hidden + tanh:  t.T = tanh(Wh @ a1.T + bh)
    t = jnp.tanh(jnp.dot(wh_ref[...], a1, preferred_element_type=f32)
                 + bh_ref[...])                        # (H, TB)

    # rbf_output via the expanded quadratic form:
    #   a2.T = exp( (2*g2*c2) @ t.T + k2 - g2 * ||t||^2 )
    v2 = v2_ref[...]                                   # (O, 3) = [g2, k2, bo]
    g2, k2, bo = v2[:, 0:1], v2[:, 1:2], v2[:, 2:3]
    t_sq = jnp.sum(t * t, axis=0, keepdims=True)       # (1, TB)
    a2 = jnp.exp(jnp.dot(a2_ref[...], t, preferred_element_type=f32)
                 + k2 - g2 * t_sq)                     # (O, TB)

    # fc_output:  out.T = Wo @ tanh(a2.T) + bo     (lane-dense, unmasked store)
    out_ref[...] = (jnp.dot(wo_ref[...], jnp.tanh(a2),
                            preferred_element_type=f32) + bo)


# ----------------------------------------------------------------------------
# Parameter init (PyTorch-style: randn centers/widths, uniform Linear bounds)
# ----------------------------------------------------------------------------
def init_params(key, latent_dim, hidden_dim, output_dim):
    ks = jax.random.split(key, 8)
    p = {}
    p["C1"] = jax.random.normal(ks[0], (hidden_dim, latent_dim), jnp.float32)
    p["w1"] = jax.random.normal(ks[1], (hidden_dim,), jnp.float32)
    b = 1.0 / math.sqrt(hidden_dim)
    p["Wh"] = jax.random.uniform(ks[2], (hidden_dim, hidden_dim), jnp.float32, -b, b)
    p["bh"] = jax.random.uniform(ks[3], (hidden_dim,), jnp.float32, -b, b)
    p["C2"] = jax.random.normal(ks[4], (output_dim, hidden_dim), jnp.float32)
    p["w2"] = jax.random.normal(ks[5], (output_dim,), jnp.float32)
    b = 1.0 / math.sqrt(output_dim)
    p["Wo"] = jax.random.uniform(ks[6], (output_dim, output_dim), jnp.float32, -b, b)
    p["bo"] = jax.random.uniform(ks[7], (output_dim,), jnp.float32, -b, b)
    return p


# ----------------------------------------------------------------------------
# One-time weight preparation (all layout plumbing hoisted out of the forward)
# ----------------------------------------------------------------------------
def prepare_params(params):
    C1, w1 = params["C1"], params["w1"]                # (H, L), (H,)
    C2, w2 = params["C2"], params["w2"]                # (O, H), (O,)

    g1 = 1.0 / (2.0 * w1 * w1)                         # (H,)
    g2 = 1.0 / (2.0 * w2 * w2)                         # (O,)

    # First RBF folded into one matmul on the augmented input [x; ||x||^2; 1].
    A1 = 2.0 * g1[:, None] * C1                        # (H, L)
    k1 = -g1 * jnp.sum(C1 * C1, axis=1)                # (H,)
    A1_aug = jnp.concatenate([A1, -g1[:, None], k1[:, None]], axis=1)  # (H, L+2)

    # Second RBF (epilogue stays in-kernel since it depends on t).
    A2 = 2.0 * g2[:, None] * C2                        # (O, H)
    k2 = -g2 * jnp.sum(C2 * C2, axis=1)                # (O,)

    bh = params["bh"][:, None]                         # (H, 1) column
    V2 = jnp.stack([g2, k2, params["bo"]], axis=1)     # (O, 3) = [g2, k2, bo]

    # Torch Linear weights are (out, in): exactly what the feature-major
    # (transposed) matmuls need — no weight transposes at all.
    return {"A1_aug": A1_aug, "bh": bh, "Wh": params["Wh"],
            "A2": A2, "V2": V2, "Wo": params["Wo"]}


# ----------------------------------------------------------------------------
# Wrapper: batch-tiled pallas_call (batch on the lane axis)
# ----------------------------------------------------------------------------
@partial(jax.jit, static_argnames=("tile_b",))
def decoder_rbf_forward(prep, x, *, tile_b=None):
    x = x.astype(jnp.float32)
    B, L = x.shape
    H = prep["Wh"].shape[0]
    O = prep["Wo"].shape[0]
    LA = prep["A1_aug"].shape[1]                       # L + 2

    # Default: exactly 2 (even) fat grid steps — keeps both v7x TCs busy and
    # amortizes per-step pipeline overhead on single-TC v5e/v6e.
    if tile_b is None:
        tile_b = max(128, _round_up(-(-B // 2), 128))
    tb = max(128, _round_up(min(tile_b, B), 128))
    Bp = _round_up(B, tb)

    # Feature-major input slab: rows [x.T ; ||x||^2 ; 1], batch on lanes.
    x_sq = jnp.sum(x * x, axis=-1, keepdims=True)      # (B, 1)
    ones = jnp.ones((B, 1), jnp.float32)
    x_aug = jnp.concatenate([x, x_sq, ones], axis=1).T  # (LA, B)
    if Bp != B:
        x_aug = jnp.pad(x_aug, ((0, 0), (0, Bp - B)))

    out_t = pl.pallas_call(
        _decoder_rbf_kernel,
        out_shape=jax.ShapeDtypeStruct((O, Bp), jnp.float32),
        grid_spec=pltpu.PrefetchScalarGridSpec(
            num_scalar_prefetch=0,
            grid=(Bp // tb,),
            in_specs=[
                pl.BlockSpec((LA, tb), lambda i: (0, i)),   # x_aug (batch-tiled)
                pl.BlockSpec((H, LA), lambda i: (0, 0)),    # A1_aug (resident)
                pl.BlockSpec((H, 1), lambda i: (0, 0)),     # bh
                pl.BlockSpec((H, H), lambda i: (0, 0)),     # Wh
                pl.BlockSpec((O, H), lambda i: (0, 0)),     # A2
                pl.BlockSpec((O, 3), lambda i: (0, 0)),     # V2 = [g2, k2, bo]
                pl.BlockSpec((O, O), lambda i: (0, 0)),     # Wo
            ],
            out_specs=pl.BlockSpec((O, tb), lambda i: (0, i)),
        ),
        compiler_params=pltpu.CompilerParams(
            dimension_semantics=("parallel",)),
    )(x_aug, prep["A1_aug"], prep["bh"], prep["Wh"], prep["A2"],
      prep["V2"], prep["Wo"])

    # Tiny (O x B) slab back to module orientation.
    return out_t[:, :B].T                               # (B, O)


# ----------------------------------------------------------------------------
# Pure-JAX reference (mirrors the torch module literally)
# ----------------------------------------------------------------------------
def reference_forward(params, x):
    def rbf(v, centers, widths):
        d = jnp.sqrt(jnp.sum((v[:, None, :] - centers[None, :, :]) ** 2, axis=2))
        alpha = d / jnp.sqrt(2.0 * widths * widths)
        return jnp.exp(-(alpha * alpha))

    a1 = rbf(x, params["C1"], params["w1"])
    t = jnp.tanh(a1 @ params["Wh"].T + params["bh"])
    a2 = rbf(t, params["C2"], params["w2"])
    return jnp.tanh(a2) @ params["Wo"].T + params["bo"]


if __name__ == "__main__":
    B, latent_dim, hidden_dim, output_dim = 2048, 8, 64, 16
    key = jax.random.PRNGKey(0)
    kx, kp = jax.random.split(key)

    x = jax.random.normal(kx, (B, latent_dim), jnp.float32)
    params = init_params(kp, latent_dim, hidden_dim, output_dim)
    prep = prepare_params(params)

    out = decoder_rbf_forward(prep, x)      # default: 2 even grid steps
    jax.block_until_ready(out)

    ref = reference_forward(params, x)
    assert out.shape == ref.shape, (out.shape, ref.shape)
    assert jnp.allclose(out, ref, atol=1e-3, rtol=1e-3), \
        float(jnp.max(jnp.abs(out - ref)))

    print("KERNEL_OK")
</pallas_src>

<mosaic_0001>
module attributes {stable_mosaic.version = 11 : i64} {
  func.func @_decoder_rbf_kernel(%arg0: i32, %arg1: memref<10x1024xf32, #tpu.memory_space<vmem>>, %arg2: memref<64x10xf32, #tpu.memory_space<vmem>>, %arg3: memref<64x1xf32, #tpu.memory_space<vmem>>, %arg4: memref<64x64xf32, #tpu.memory_space<vmem>>, %arg5: memref<16x64xf32, #tpu.memory_space<vmem>>, %arg6: memref<16x3xf32, #tpu.memory_space<vmem>>, %arg7: memref<16x16xf32, #tpu.memory_space<vmem>>, %arg8: memref<16x1024xf32, #tpu.memory_space<vmem>>) attributes {dimension_semantics = [#tpu.dimension_semantics<parallel>], iteration_bounds = array<i64: 2>, scalar_prefetch = 0 : i64, scratch_operands = 0 : i64, tpu.core_type = #tpu.core_type<tc>, window_params = [{transform_indices = @transform_0, window_bounds = array<i64: 10, 1024>}, {pipeline_mode = #tpu.pipeline_mode<synchronous>, transform_indices = @transform_1, window_bounds = array<i64: 64, 10>}, {pipeline_mode = #tpu.pipeline_mode<synchronous>, transform_indices = @transform_2, window_bounds = array<i64: 64, 1>}, {pipeline_mode = #tpu.pipeline_mode<synchronous>, transform_indices = @transform_3, window_bounds = array<i64: 64, 64>}, {pipeline_mode = #tpu.pipeline_mode<synchronous>, transform_indices = @transform_4, window_bounds = array<i64: 16, 64>}, {pipeline_mode = #tpu.pipeline_mode<synchronous>, transform_indices = @transform_5, window_bounds = array<i64: 16, 3>}, {pipeline_mode = #tpu.pipeline_mode<synchronous>, transform_indices = @transform_6, window_bounds = array<i64: 16, 16>}, {transform_indices = @transform_7, window_bounds = array<i64: 16, 1024>}]} {
    %c0 = arith.constant 0 : index
    %c0_0 = arith.constant 0 : index
    %0 = vector.load %arg1[%c0, %c0_0] : memref<10x1024xf32, #tpu.memory_space<vmem>>, vector<10x1024xf32>
    %c0_1 = arith.constant 0 : index
    %c0_2 = arith.constant 0 : index
    %1 = vector.load %arg2[%c0_1, %c0_2] : memref<64x10xf32, #tpu.memory_space<vmem>>, vector<64x10xf32>
    %cst = arith.constant dense<0.000000e+00> : vector<64x1024xf32>
    %2 = tpu.matmul %1, %0, %cst {dimension_numbers = #tpu.dot_dimension_numbers<[1], [0], [0], [1], [0, 0, 1, 1], [], []>} : vector<64x10xf32>, vector<10x1024xf32>, vector<64x1024xf32> -> vector<64x1024xf32>
    %3 = math.exp %2 : vector<64x1024xf32>
    %c0_3 = arith.constant 0 : index
    %c0_4 = arith.constant 0 : index
    %4 = vector.load %arg4[%c0_3, %c0_4] : memref<64x64xf32, #tpu.memory_space<vmem>>, vector<64x64xf32>
    %cst_5 = arith.constant dense<0.000000e+00> : vector<64x1024xf32>
    %5 = tpu.matmul %4, %3, %cst_5 {dimension_numbers = #tpu.dot_dimension_numbers<[1], [0], [0], [1], [0, 0, 1, 1], [], []>} : vector<64x64xf32>, vector<64x1024xf32>, vector<64x1024xf32> -> vector<64x1024xf32>
    %c0_6 = arith.constant 0 : index
    %c0_7 = arith.constant 0 : index
    %6 = vector.load %arg3[%c0_6, %c0_7] : memref<64x1xf32, #tpu.memory_space<vmem>>, vector<64x1xf32>
    %7 = vector.broadcast %6 : vector<64x1xf32> to vector<64x1024xf32>
    %8 = arith.addf %5, %7 : vector<64x1024xf32>
    %9 = math.tanh %8 : vector<64x1024xf32>
    %c0_8 = arith.constant 0 : index
    %c0_9 = arith.constant 0 : index
    %10 = vector.load %arg6[%c0_8, %c0_9] : memref<16x3xf32, #tpu.memory_space<vmem>>, vector<16x3xf32>
    %11 = vector.extract_strided_slice %10 {offsets = [0, 0], sizes = [16, 1], strides = [1, 1]} : vector<16x3xf32> to vector<16x1xf32>
    %12 = vector.extract_strided_slice %10 {offsets = [0, 1], sizes = [16, 1], strides = [1, 1]} : vector<16x3xf32> to vector<16x1xf32>
    %13 = vector.extract_strided_slice %10 {offsets = [0, 2], sizes = [16, 1], strides = [1, 1]} : vector<16x3xf32> to vector<16x1xf32>
    %14 = arith.mulf %9, %9 : vector<64x1024xf32>
    %cst_10 = arith.constant dense<0.000000e+00> : vector<1024xf32>
    %15 = vector.multi_reduction <add>, %14, %cst_10 [0] : vector<64x1024xf32> to vector<1024xf32>
    %16 = vector.shape_cast %15 : vector<1024xf32> to vector<1x1024xf32>
    %c0_11 = arith.constant 0 : index
    %c0_12 = arith.constant 0 : index
    %17 = vector.load %arg5[%c0_11, %c0_12] : memref<16x64xf32, #tpu.memory_space<vmem>>, vector<16x64xf32>
    %cst_13 = arith.constant dense<0.000000e+00> : vector<16x1024xf32>
    %18 = tpu.matmul %17, %9, %cst_13 {dimension_numbers = #tpu.dot_dimension_numbers<[1], [0], [0], [1], [0, 0, 1, 1], [], []>} : vector<16x64xf32>, vector<64x1024xf32>, vector<16x1024xf32> -> vector<16x1024xf32>
    %19 = vector.broadcast %12 : vector<16x1xf32> to vector<16x1024xf32>
    %20 = arith.addf %18, %19 : vector<16x1024xf32>
    %21 = vector.broadcast %11 : vector<16x1xf32> to vector<16x1024xf32>
    %22 = vector.broadcast %16 : vector<1x1024xf32> to vector<16x1024xf32>
    %23 = arith.mulf %21, %22 : vector<16x1024xf32>
    %24 = arith.subf %20, %23 : vector<16x1024xf32>
    %25 = math.exp %24 : vector<16x1024xf32>
    %c0_14 = arith.constant 0 : index
    %c0_15 = arith.constant 0 : index
    %26 = vector.load %arg7[%c0_14, %c0_15] : memref<16x16xf32, #tpu.memory_space<vmem>>, vector<16x16xf32>
    %27 = math.tanh %25 : vector<16x1024xf32>
    %cst_16 = arith.constant dense<0.000000e+00> : vector<16x1024xf32>
    %28 = tpu.matmul %26, %27, %cst_16 {dimension_numbers = #tpu.dot_dimension_numbers<[1], [0], [0], [1], [0, 0, 1, 1], [], []>} : vector<16x16xf32>, vector<16x1024xf32>, vector<16x1024xf32> -> vector<16x1024xf32>
    %29 = vector.broadcast %13 : vector<16x1xf32> to vector<16x1024xf32>
    %30 = arith.addf %28, %29 : vector<16x1024xf32>
    %c0_17 = arith.constant 0 : index
    %c0_18 = arith.constant 0 : index
    %31 = vector.load %arg8[%c0_17, %c0_18] : memref<16x1024xf32, #tpu.memory_space<vmem>>, vector<16x1024xf32>
    tpu.vector_store %arg8[%c0_17, %c0_18], %30 {strides = array<i32>} : memref<16x1024xf32, #tpu.memory_space<vmem>>, vector<16x1024xf32>,
    return
  }
  func.func @transform_0(%arg0: i32) -> (i32, i32) {
    %c0_i32 = arith.constant 0 : i32
    %c0_i32_0 = arith.constant 0 : i32
    return %c0_i32, %arg0 : i32, i32
  }
  func.func @transform_1(%arg0: i32) -> (i32, i32) {
    %c0_i32 = arith.constant 0 : i32
    %c0_i32_0 = arith.constant 0 : i32
    %c0_i32_1 = arith.constant 0 : i32
    return %c0_i32, %c0_i32_0 : i32, i32
  }
  func.func @transform_2(%arg0: i32) -> (i32, i32) {
    %c0_i32 = arith.constant 0 : i32
    %c0_i32_0 = arith.constant 0 : i32
    %c0_i32_1 = arith.constant 0 : i32
    return %c0_i32, %c0_i32_0 : i32, i32
  }
  func.func @transform_3(%arg0: i32) -> (i32, i32) {
    %c0_i32 = arith.constant 0 : i32
    %c0_i32_0 = arith.constant 0 : i32
    %c0_i32_1 = arith.constant 0 : i32
    return %c0_i32, %c0_i32_0 : i32, i32
  }
  func.func @transform_4(%arg0: i32) -> (i32, i32) {
    %c0_i32 = arith.constant 0 : i32
    %c0_i32_0 = arith.constant 0 : i32
    %c0_i32_1 = arith.constant 0 : i32
    return %c0_i32, %c0_i32_0 : i32, i32
  }
  func.func @transform_5(%arg0: i32) -> (i32, i32) {
    %c0_i32 = arith.constant 0 : i32
    %c0_i32_0 = arith.constant 0 : i32
    %c0_i32_1 = arith.constant 0 : i32
    return %c0_i32, %c0_i32_0 : i32, i32
  }
  func.func @transform_6(%arg0: i32) -> (i32, i32) {
    %c0_i32 = arith.constant 0 : i32
    %c0_i32_0 = arith.constant 0 : i32
    %c0_i32_1 = arith.constant 0 : i32
    return %c0_i32, %c0_i32_0 : i32, i32
  }
  func.func @transform_7(%arg0: i32) -> (i32, i32) {
    %c0_i32 = arith.constant 0 : i32
    %c0_i32_0 = arith.constant 0 : i32
    return %c0_i32, %arg0 : i32, i32
  }
}

</mosaic_0001>

<bundles_post_ra>
// kernel: decoder_rbf_forward.1
= control target key start
LH: loop header
LB: loop body
LE: loop exit
PB: predicated region body
PF: predicated region fallthrough
CT: control target
= control target key end

     0   :  { %12 = vsyncpa [#allocation4], 0  ;;  %s3828_s0 = inlined_call_operand.vmem [shape: f32[10,2048], index: 0, kind: input, shape index: {}]   ;;  %s3829_s1 = inlined_call_operand.vmem [shape: f32[64,10], index: 1, kind: input, shape index: {}]   ;;  %s3830_s2 = inlined_call_operand.vmem [shape: f32[64,1], index: 2, kind: input, shape index: {}]   ;;  %s3831_s3 = inlined_call_operand.vmem [shape: f32[64,64], index: 3, kind: input, shape index: {}]   ;;  %s3832_s4 = inlined_call_operand.vmem [shape: f32[16,64], index: 4, kind: input, shape index: {}]   ;;  %s3833_s5 = inlined_call_operand.vmem [shape: f32[16,3], index: 5, kind: input, shape index: {}]   ;;  %s3834_s6 = inlined_call_operand.vmem [shape: f32[16,16], index: 6, kind: input, shape index: {}]   ;;  %s3835_s7 = inlined_call_operand.hbm [shape: f32[16,2048], index: 7, kind: output, shape index: {}]  }
   0x1   :  { %14 = vsyncpa [#allocation4 + $0x1], 0  ;;  %s2762_s24 = smov 0   ;;  %s2764_s25 = smov 0  }
   0x2   :  { %s2766_s26 = smov 0   ;;  %s2768_s27 = smov 0  }
   0x3 LB: > { %s2092_s28 = sadd.s32 4294967295, %s2714_s27   ;;  %s2093_s29 = sadd.s32 4294967294, %s2714_s27   ;;  %s2714_s27 = sphi %s2768_s27, %s3841_s27   ;;  %s2710_s26 = sphi %s2766_s26, %s3840_s26   ;;  %s2706_s25 = sphi %s2764_s25, %s3839_s25   ;;  %s2702_s24 = sphi %s2762_s24, %s3838_s24  }
   0x4   : > { %s2785_s30 = sadd.s32 1, %s2714_s27   ;;  %s27_s8 = sadd.s32 1, %s2710_s26 }
   0x5   : > { %s24_s9 = ssub.s32 %s2714_s27, %s2785_s30  ;;  %p34_p0 = scmp.ne.s32.totalorder %s2710_s26, %s2706_s25 }
   0x6   : > { %p25_p1 = scmp.eq.s32.totalorder %s24_s9, 0  ;;  %p35_p2 = scmp.eq.s32.totalorder %s2714_s27, 0 }
   0x7   : > { %p190_p3 = scmp.eq.s32.totalorder %s2092_s28, 1  ;;  %p195_p4 = scmp.ne.s32.totalorder %s2706_s25, %s2702_s24 }
   0x8   : > { %s2798_s10 = scalar_select %p25_p1, %s2710_s26, %s27_s8  }
   0x9   : > { %p36_p5 = por %p35_p2, %p34_p0  ;;  %p2800_p6 = por %p190_p3, %p34_p0 }
   0xa   : > { %p196_p7 = scmp.eq.s32.totalorder %s2093_s29, 1  ;;  %p2095_p9 = scmp.ge.s32.totalorder %s2714_s27, 2 }
   0xc   : > { %p2804_p8 = por %p196_p7, %p195_p4  ;;  %230 = sbr.rel (%p2095_p9) target bundleno = 37 (0x25), region = 40 }
  0x11   : > { %233 = sbr.rel (!%p36_p5) target bundleno = 37 (0x25), region = 44  ;;  %s235_s13 = sand.u32 (%p36_p5), 1, %s2710_s26  }
  0x12   : > { %s2275_s14 = sshll.u32 (%p36_p5), %s2714_s27, 6  ;;  %s2096_s15 = sshll.u32 (%p36_p5), %s235_s13, 7 }
  0x13   : > { %s2816_s18 = scalar_lea.vmem (%p36_p5), %s3828_s0, %s2275_s14  ;;  %s237_s19 = scalar_lea.vmem (%p36_p5), [#allocation2], %s2096_s15 }
  0x14   : > { %v253_v0 = vld [vmem:[%s2816_s18] sm:$0xff] (%p36_p5)  ;;  %v255_v1 = vld [vmem:[%s2816_s18 + $0x8] sm:$0xff] (%p36_p5)  ;;  %v257_v2 = vld [vmem:[%s2816_s18 + $0x10] sm:$0xff] (%p36_p5) }
  0x15   : > { %254 = vst [vmem:[%s237_s19] sm:$0xff] (%p36_p5), %v253_v0  ;;  %v259_v3 = vld [vmem:[%s2816_s18 + $0x18] sm:$0xff] (%p36_p5)  ;;  %v261_v4 = vld [vmem:[%s2816_s18 + $0x20] sm:$0xff] (%p36_p5)  ;;  %v263_v5 = vld [vmem:[%s2816_s18 + $0x28] sm:$0xff] (%p36_p5) }
  0x16   : > { %256 = vst [vmem:[%s237_s19 + $0x8] sm:$0xff] %v255_v1  ;;  %v265_v6 = vld [vmem:[%s2816_s18 + $0x30] sm:$0xff]  ;;  %v267_v7 = vld [vmem:[%s2816_s18 + $0x38] sm:$0xff]  ;;  %v269_v8 = vld [vmem:[%s2816_s18 + $0x80] sm:$0xff] }
  0x17   : > { %258 = vst [vmem:[%s237_s19 + $0x10] sm:$0xff] %v257_v2  ;;  %v271_v9 = vld [vmem:[%s2816_s18 + $0x88] sm:$0xff]  ;;  %v273_v10 = vld [vmem:[%s2816_s18 + $0x90] sm:$0xff]  ;;  %v275_v11 = vld [vmem:[%s2816_s18 + $0x98] sm:$0xff] }
  0x18   : > { %260 = vst [vmem:[%s237_s19 + $0x18] sm:$0xff] %v259_v3  ;;  %v277_v12 = vld [vmem:[%s2816_s18 + $0xa0] sm:$0xff]  ;;  %v279_v13 = vld [vmem:[%s2816_s18 + $0xa8] sm:$0xff]  ;;  %v281_v14 = vld [vmem:[%s2816_s18 + $0xb0] sm:$0xff] }
  0x19   : > { %262 = vst [vmem:[%s237_s19 + $0x20] sm:$0xff] %v261_v4  ;;  %v283_v15 = vld [vmem:[%s2816_s18 + $0xb8] sm:$0xff] }
  0x1a   : > { %264 = vst [vmem:[%s237_s19 + $0x28] sm:$0xff] %v263_v5 }
  0x1b   : > { %266 = vst [vmem:[%s237_s19 + $0x30] sm:$0xff] %v265_v6 }
  0x1c   : > { %268 = vst [vmem:[%s237_s19 + $0x38] sm:$0xff] %v267_v7 }
  0x1d   : > { %270 = vst [vmem:[%s237_s19 + $0x40] sm:$0xff] %v269_v8 }
  0x1e   : > { %272 = vst [vmem:[%s237_s19 + $0x48] sm:$0xff] %v271_v9 }
  0x1f   : > { %274 = vst [vmem:[%s237_s19 + $0x50] sm:$0xff] %v273_v10 }
  0x20   : > { %276 = vst [vmem:[%s237_s19 + $0x58] sm:$0xff] %v275_v11 }
  0x21   : > { %278 = vst [vmem:[%s237_s19 + $0x60] sm:$0xff] %v277_v12 }
  0x22   : > { %280 = vst [vmem:[%s237_s19 + $0x68] sm:$0xff] %v279_v13 }
  0x23   : > { %282 = vst [vmem:[%s237_s19 + $0x70] sm:$0xff] %v281_v14 }
  0x24   : > { %284 = vst [vmem:[%s237_s19 + $0x78] sm:$0xff] %v283_v15 }
  0x25 PF: > { %p2099_p10 = scmp.ge.s32.totalorder %s2714_s27, 1  ;;  %p289_p11 = scmp.lt.s32.totalorder %s2714_s27, 3 }
  0x27   : > { %p290_p12 = pnand %p2099_p10, %p289_p11 }
  0x28   : > { %s296_s20 = sand.u32 (!%p290_p12), 1, %s2706_s25   ;;  %s2672_s8 = scalar_lea.hbm (!%p290_p12), %s3835_s7, 256 }
  0x29   : > { %293 = sbr.rel (%p290_p12) target bundleno = 856 (0x358), region = 67  ;;  %s2839_s21 = sshll.u32 (!%p290_p12), %s296_s20, 7 }
  0x2a   : > { %s2842_s22 = scalar_lea.vmem (!%p290_p12), [#allocation2], %s2839_s21  ;;  %s3771_s13 = scalar_lea.vmem (!%p290_p12), [#allocation3], %s2839_s21 }
  0x2b   : > { %s2276_s21 = sshll.u32 (!%p290_p12), %s2092_s28, 6  ;;  %s2022_s17 = sshll.u32 (!%p290_p12), %s3771_s13, 4  ;;  %s2023_s17 = int_to_ptr.vmem [resolvable:$true] %s2022_s17 }
  0x2c   : > { %s2021_s16 = scalar_lea.hbm (!%p290_p12), %s3835_s7, %s2276_s21  ;;  %s2010_s28 = scalar_lea.sflag (!%p290_p12), [#allocation4], %s296_s20 }
  0x2d   : > { %s3793_s18 = sshll.u32 (!%p290_p12), %s2021_s16, 4  ;;  %s2025_s18 = int_to_ptr.hbm [resolvable:$true] %s3793_s18 }
  0x2e   : > { %vm378_vm0 = vcmask 1041408   ;;  %v337_v16 = vld [vmem:[%s2842_s22 + $0x40] sm:$0x3]  ;;  %v338_v17 = vld [vmem:[%s2842_s22 + $0x48] sm:$0x3]  ;;  %v331_v22 = vld [vmem:[%s2842_s22 + $0x10] sm:$0xff] }
  0x2f   : > { %v339_v18 = vld [vmem:[%s2842_s22 + $0x50] sm:$0x3]  ;;  %2102 = vmatpush.msk.msra.mxu0 %vm378_vm0, %v337_v16  ;;  %2111 = vmatpush.msk.msra.mxu1 %vm378_vm0, %v338_v17  ;;  %v340_v19 = vld [vmem:[%s2842_s22 + $0x58] sm:$0x3]  ;;  %v329_v20 = vld [vmem:[%s2842_s22] sm:$0xff]  ;;  %vm353_vm1 = vcmask 80896  }
  0x30   : > { %v330_v21 = vld [vmem:[%s2842_s22 + $0x8] sm:$0xff]  ;;  %2120 = vmatpush.msk.msra.mxu2 %vm378_vm0, %v339_v18  ;;  %2129 = vmatpush.msk.msra.mxu3 %vm378_vm0, %v340_v19  ;;  %v332_v23 = vld [vmem:[%s2842_s22 + $0x18] sm:$0xff]  ;;  %v2859_v24 = vld [vmem:[%s3829_s1] sm:$0xff]  ;;  %vm915_vm2 = vcmask 523264   ;;  %vm1802_vm3 = vcmask 130048   ;;  %s2666_s19 = sshra.s32 %s2025_s18, 4  ;;  %s2667_s19 = int_to_ptr.hbm [resolvable:$true] %s2666_s19 }
  0x31   : > { %418 = vmatpush.msra.mxu0 %v329_v20  ;;  %459 = vmatpush.msra.mxu1 %v330_v21  ;;  %v346_v25 = vld [vmem:[%s3829_s1 + $0x8] sm:$0xff]  ;;  %v347_v26 = vld [vmem:[%s3829_s1 + $0x10] sm:$0xff]  ;;  %v344_v28 = vld [vmem:[%s2842_s22 + $0x78] sm:$0x3]  ;;  %v2716_v20 = vmov 0   ;;  %s2668_s23 = scalar_lea.hbm %s2667_s19, 128  ;;  %p2673_p2 = scmp.lt.s32.totalorder %s2667_s19, %s3835_s7 }
  0x32   : > { %500 = vmatpush.msra.mxu2 %v331_v22  ;;  %541 = vmatpush.msra.mxu3 %v332_v23  ;;  %v343_v27 = vld [vmem:[%s2842_s22 + $0x70] sm:$0x3]  ;;  %v348_v29 = vld [vmem:[%s3829_s1 + $0x18] sm:$0xff]  ;;  %v341_v30 = vld [vmem:[%s2842_s22 + $0x60] sm:$0x3]  ;;  %p2669_p13 = scmp.ne.s32.totalorder %s2667_s19, %s2668_s23  ;;  %p2674_p3 = scmp.lt.s32.totalorder %s2672_s8, %s2668_s23 }
  0x33   : > { %2103 = vmatmul.msk.f32.vlgmr.msra.gmra.mxu0 %vm353_vm1, %v2859_v24  ;;  %2112 = vmatmul.msk.f32.vlgmr.msra.gmra.mxu1 %vm353_vm1, %v2859_v24  ;;  %v342_v31 = vld [vmem:[%s2842_s22 + $0x68] sm:$0x3]  ;;  %v333_v32 = vld [vmem:[%s2842_s22 + $0x20] sm:$0xff]  ;;  %v335_v34 = vld [vmem:[%s2842_s22 + $0x30] sm:$0xff] }
  0x34   : > { %2121 = vmatmul.msk.f32.vlgmr.msra.gmra.mxu2 %vm353_vm1, %v2859_v24  ;;  %2130 = vmatmul.msk.f32.vlgmr.msra.gmra.mxu3 %vm353_vm1, %v2859_v24  ;;  %v334_v33 = vld [vmem:[%s2842_s22 + $0x28] sm:$0xff]  ;;  %v336_v35 = vld [vmem:[%s2842_s22 + $0x38] sm:$0xff]  ;;  %v349_v36 = vld [vmem:[%s3829_s1 + $0x20] sm:$0xff]  ;;  %p2670_p0 = pnand %p2669_p13, %p2800_p6  ;;  %p2675_p4 = por %p2674_p3, %p2673_p2 }
  0x35   : > { %2156 = vmatpush.msk.msrb.mxu2 %vm378_vm0, %v343_v27  ;;  %2165 = vmatpush.msk.msrb.mxu3 %vm378_vm0, %v344_v28  ;;  %v350_v37 = vld [vmem:[%s3829_s1 + $0x28] sm:$0xff]  ;;  %v351_v38 = vld [vmem:[%s3829_s1 + $0x30] sm:$0xff]  ;;  %v352_v39 = vld [vmem:[%s3829_s1 + $0x38] sm:$0xff] }
  0x36   : > { %2138 = vmatpush.msk.msrb.mxu0 %vm378_vm0, %v341_v30  ;;  %2147 = vmatpush.msk.msrb.mxu1 %vm378_vm0, %v342_v31  ;;  %v872_v21 = vld [vmem:[%s3830_s2 + $0x28] sm:$0xff]  ;;  %p2671_p1 = pneg %p2670_p0 }
  0x37   : > { %664 = vmatpush.msrb.mxu2 %v335_v34  ;;  %705 = vmatpush.msrb.mxu3 %v336_v35 }
  0x38   : > { %582 = vmatpush.msrb.mxu0 %v333_v32  ;;  %623 = vmatpush.msrb.mxu1 %v334_v33  ;;  %p2676_p5 = pnand %p2675_p4, %p2671_p1 }
  0x39   : > { %2323 = vset.pattern.permute.xlu1 %v2716_v20  ;;  %2322 = vset.pattern.permute.xlu0 %v2716_v20 }
  0x3a   : > { %902 = vperm.xlu1 %2323, %v872_v21   ;;  %2324 = vset.pattern.permute.xlu2 %v2716_v20  ;;  %v873_v21 = vld [vmem:[%s3830_s2 + $0x30] sm:$0xff] }
  0x3b   : > { %2104 = vmatmul.msk.f32.gmra.mxu0 %vm353_vm1, %v346_v25  ;;  %2113 = vmatmul.msk.f32.gmra.mxu1 %vm353_vm1, %v346_v25 }
  0x3c   : > { %2122 = vmatmul.msk.f32.gmra.mxu2 %vm353_vm1, %v346_v25  ;;  %2131 = vmatmul.msk.f32.gmra.mxu3 %vm353_vm1, %v346_v25 }
  0x43   : > { %2105 = vmatmul.msk.f32.gmra.mxu0 %vm353_vm1, %v347_v26  ;;  %2114 = vmatmul.msk.f32.gmra.mxu1 %vm353_vm1, %v347_v26 }
  0x44   : > { %2123 = vmatmul.msk.f32.gmra.mxu2 %vm353_vm1, %v347_v26  ;;  %2132 = vmatmul.msk.f32.gmra.mxu3 %vm353_vm1, %v347_v26 }
  0x4b   : > { %2106 = vmatmul.msk.f32.gmra.mxu0 %vm353_vm1, %v348_v29  ;;  %2115 = vmatmul.msk.f32.gmra.mxu1 %vm353_vm1, %v348_v29 }
  0x4c   : > { %2124 = vmatmul.msk.f32.gmra.mxu2 %vm353_vm1, %v348_v29  ;;  %2133 = vmatmul.msk.f32.gmra.mxu3 %vm353_vm1, %v348_v29 }
  0x53   : > { %2107 = vmatmul.msk.f32.gmra.mxu0 %vm353_vm1, %v349_v36  ;;  %2116 = vmatmul.msk.f32.gmra.mxu1 %vm353_vm1, %v349_v36 }
  0x54   : > { %2125 = vmatmul.msk.f32.gmra.mxu2 %vm353_vm1, %v349_v36  ;;  %2134 = vmatmul.msk.f32.gmra.mxu3 %vm353_vm1, %v349_v36 }
  0x5b   : > { %2108 = vmatmul.msk.f32.gmra.mxu0 %vm353_vm1, %v350_v37  ;;  %2117 = vmatmul.msk.f32.gmra.mxu1 %vm353_vm1, %v350_v37 }
  0x5c   : > { %2126 = vmatmul.msk.f32.gmra.mxu2 %vm353_vm1, %v350_v37  ;;  %2135 = vmatmul.msk.f32.gmra.mxu3 %vm353_vm1, %v350_v37 }
  0x63   : > { %2109 = vmatmul.msk.f32.gmra.mxu0 %vm353_vm1, %v351_v38  ;;  %2118 = vmatmul.msk.f32.gmra.mxu1 %vm353_vm1, %v351_v38 }
  0x64   : > { %2127 = vmatmul.msk.f32.gmra.mxu2 %vm353_vm1, %v351_v38  ;;  %2136 = vmatmul.msk.f32.gmra.mxu3 %vm353_vm1, %v351_v38 }
  0x6b   : > { %2110 = vmatmul.msk.f32.gmra.mxu0 %vm353_vm1, %v352_v39  ;;  %2119 = vmatmul.msk.f32.gmra.mxu1 %vm353_vm1, %v352_v39 }
  0x6c   : > { %2128 = vmatmul.msk.f32.gmra.mxu2 %vm353_vm1, %v352_v39  ;;  %2137 = vmatmul.msk.f32.gmra.mxu3 %vm353_vm1, %v352_v39 }
  0x73   : > { %2139 = vmatmul.msk.f32.vlgmr.msrb.gmra.mxu0 %vm353_vm1, %v2859_v24  ;;  %2148 = vmatmul.msk.f32.vlgmr.msrb.gmra.mxu1 %vm353_vm1, %v2859_v24 }
  0x74   : > { %2157 = vmatmul.msk.f32.vlgmr.msrb.gmra.mxu2 %vm353_vm1, %v2859_v24  ;;  %2166 = vmatmul.msk.f32.vlgmr.msrb.gmra.mxu3 %vm353_vm1, %v2859_v24 }
  0x7b   : > { %2140 = vmatmul.msk.f32.gmra.mxu0 %vm353_vm1, %v346_v25  ;;  %2149 = vmatmul.msk.f32.gmra.mxu1 %vm353_vm1, %v346_v25 }
  0x7c   : > { %2158 = vmatmul.msk.f32.gmra.mxu2 %vm353_vm1, %v346_v25  ;;  %2167 = vmatmul.msk.f32.gmra.mxu3 %vm353_vm1, %v346_v25 }
  0x83   : > { %2141 = vmatmul.msk.f32.gmra.mxu0 %vm353_vm1, %v347_v26  ;;  %2150 = vmatmul.msk.f32.gmra.mxu1 %vm353_vm1, %v347_v26 }
  0x84   : > { %2159 = vmatmul.msk.f32.gmra.mxu2 %vm353_vm1, %v347_v26  ;;  %2168 = vmatmul.msk.f32.gmra.mxu3 %vm353_vm1, %v347_v26 }
  0x8b   : > { %2142 = vmatmul.msk.f32.gmra.mxu0 %vm353_vm1, %v348_v29  ;;  %2151 = vmatmul.msk.f32.gmra.mxu1 %vm353_vm1, %v348_v29 }
  0x8c   : > { %2160 = vmatmul.msk.f32.gmra.mxu2 %vm353_vm1, %v348_v29  ;;  %2169 = vmatmul.msk.f32.gmra.mxu3 %vm353_vm1, %v348_v29 }
  0x93   : > { %2143 = vmatmul.msk.f32.gmra.mxu0 %vm353_vm1, %v349_v36  ;;  %2152 = vmatmul.msk.f32.gmra.mxu1 %vm353_vm1, %v349_v36 }
  0x94   : > { %2161 = vmatmul.msk.f32.gmra.mxu2 %vm353_vm1, %v349_v36  ;;  %2170 = vmatmul.msk.f32.gmra.mxu3 %vm353_vm1, %v349_v36 }
  0x9b   : > { %2144 = vmatmul.msk.f32.gmra.mxu0 %vm353_vm1, %v350_v37  ;;  %2153 = vmatmul.msk.f32.gmra.mxu1 %vm353_vm1, %v350_v37 }
  0x9c   : > { %2162 = vmatmul.msk.f32.gmra.mxu2 %vm353_vm1, %v350_v37  ;;  %2171 = vmatmul.msk.f32.gmra.mxu3 %vm353_vm1, %v350_v37 }
  0xa3   : > { %2145 = vmatmul.msk.f32.gmra.mxu0 %vm353_vm1, %v351_v38  ;;  %2154 = vmatmul.msk.f32.gmra.mxu1 %vm353_vm1, %v351_v38 }
  0xa4   : > { %2163 = vmatmul.msk.f32.gmra.mxu2 %vm353_vm1, %v351_v38  ;;  %2172 = vmatmul.msk.f32.gmra.mxu3 %vm353_vm1, %v351_v38 }
  0xab   : > { %2146 = vmatmul.msk.f32.gmra.mxu0 %vm353_vm1, %v352_v39  ;;  %2155 = vmatmul.msk.f32.gmra.mxu1 %vm353_vm1, %v352_v39 }
  0xac   : > { %2164 = vmatmul.msk.f32.gmra.mxu2 %vm353_vm1, %v352_v39  ;;  %2173 = vmatmul.msk.f32.gmra.mxu3 %vm353_vm1, %v352_v39 }
  0xb0   : > { %v420_v40 = vpop.f32.mrf.mxu0  ;;  %v461_v41 = vpop.f32.mrf.mxu1 }
  0xb1   : > { %v731_v62 = vmul.f32 1.442695, %v420_v40  ;;  %v733_v63 = vmul.f32 1.442695, %v461_v41 }
  0xb3   : > { %2330 = vpow2.f32 %v731_v62 }
  0xb4   : > { %2332 = vpow2.f32 %v733_v63 }
  0xb7   : > { %v2966_v42 = vpop.f32.mrf.mxu2  ;;  %v2968_v43 = vpop.f32.mrf.mxu3 }
  0xb8   : > { %v423_v44 = vpop.f32.mrf.mxu0  ;;  %v464_v45 = vpop.f32.mrf.mxu1 }
  0xb9   : > { %v747_v2 = vmul.f32 1.442695, %v423_v44  ;;  %v749_v5 = vmul.f32 1.442695, %v464_v45  ;;  %v2990_v14 = vpop.eup %2330  ;;  %v874_v44 = vld [vmem:[%s3830_s2 + $0x38] sm:$0xff]  ;;  %v871_v45 = vld [vmem:[%s3830_s2 + $0x20] sm:$0xff] }
  0xba   : > { %v2992_v17 = vpop.eup %2332  ;;  %912 = vperm.xlu0 %2322, %v874_v44   ;;  %897 = vperm.xlu1 %2323, %v871_v45   ;;  %v3121_v45 = vld [vmem:[%s3831_s3 + $0x18] sm:$0xff] }
  0xbb   : > { %2334 = vpow2.f32 %v747_v2 }
  0xbc   : > { %2336 = vpow2.f32 %v749_v5 }
  0xbf   : > { %v2970_v46 = vpop.f32.mrf.mxu2  ;;  %v2972_v47 = vpop.f32.mrf.mxu3 }
  0xc0   : > { %v426_v48 = vpop.f32.mrf.mxu0  ;;  %v467_v49 = vpop.f32.mrf.mxu1 }
  0xc1   : > { %v763_v6 = vmul.f32 1.442695, %v426_v48  ;;  %v765_v7 = vmul.f32 1.442695, %v467_v49  ;;  %v2999_v22 = vpop.eup %2334 }
  0xc2   : > { %v3002_v24 = vpop.eup %2336  ;;  %907 = vperm.xlu0 %2322, %v873_v21  }
  0xc3   : > { %2338 = vpow2.f32 %v763_v6 }
  0xc4   : > { %2340 = vpow2.f32 %v765_v7  ;;  %v751_v7 = vmul.f32 1.442695, %v2970_v46  ;;  %v737_v46 = vmul.f32 1.442695, %v2968_v43 }
  0xc7   : > { %v2974_v50 = vpop.f32.mrf.mxu2  ;;  %v2976_v51 = vpop.f32.mrf.mxu3 }
  0xc8   : > { %v429_v52 = vpop.f32.mrf.mxu0  ;;  %v470_v53 = vpop.f32.mrf.mxu1  ;;  %v769_v6 = vmul.f32 1.442695, %v2976_v51 }
  0xc9   : > { %v779_v8 = vmul.f32 1.442695, %v429_v52  ;;  %v781_v9 = vmul.f32 1.442695, %v470_v53  ;;  %v3004_v26 = vpop.eup %2338 }
  0xca   : > { %v3006_v28 = vpop.eup %2340 }
  0xcb   : > { %2342 = vpow2.f32 %v779_v8 }
  0xcc   : > { %2344 = vpow2.f32 %v781_v9 }
  0xcf   : > { %v2978_v54 = vpop.f32.mrf.mxu2  ;;  %v2980_v55 = vpop.f32.mrf.mxu3 }
  0xd0   : > { %v432_v56 = vpop.f32.mrf.mxu0  ;;  %v473_v57 = vpop.f32.mrf.mxu1  ;;  %v783_v63 = vmul.f32 1.442695, %v2978_v54 }
  0xd1   : > { %v795_v27 = vmul.f32 1.442695, %v432_v56  ;;  %v797_v29 = vmul.f32 1.442695, %v473_v57  ;;  %v3008_v30 = vpop.eup %2342 }
  0xd2   : > { %v3010_v31 = vpop.eup %2344 }
  0xd7   : > { %v2982_v58 = vpop.f32.mrf.mxu2  ;;  %v2984_v59 = vpop.f32.mrf.mxu3 }
  0xd8   : > { %v435_v60 = vpop.f32.mrf.mxu0  ;;  %v476_v61 = vpop.f32.mrf.mxu1  ;;  %v799_v57 = vmul.f32 1.442695, %v2982_v58 }
  0xd9   : > { %v811_v23 = vmul.f32 1.442695, %v435_v60  ;;  %v813_v25 = vmul.f32 1.442695, %v476_v61  ;;  %v801_v61 = vmul.f32 1.442695, %v2984_v59 }
  0xdf   : > { %v2986_v0 = vpop.f32.mrf.mxu2  ;;  %v2988_v1 = vpop.f32.mrf.mxu3 }
  0xe0   : > { %v438_v3 = vpop.f32.mrf.mxu0  ;;  %v479_v4 = vpop.f32.mrf.mxu1  ;;  %v815_v49 = vmul.f32 1.442695, %v2986_v0  ;;  %v817_v53 = vmul.f32 1.442695, %v2988_v1  ;;  %v785_v1 = vmul.f32 1.442695, %v2980_v55 }
  0xe1   : > { %v827_v10 = vmul.f32 1.442695, %v438_v3  ;;  %v829_v11 = vmul.f32 1.442695, %v479_v4  ;;  %v767_v4 = vmul.f32 1.442695, %v2974_v50 }
  0xe2   : > { %v753_v50 = vmul.f32 1.442695, %v2972_v47 }
  0xe3   : > { %2346 = vpow2.f32 %v827_v10  ;;  %v735_v10 = vmul.f32 1.442695, %v2966_v42 }
  0xe4   : > { %2348 = vpow2.f32 %v829_v11 }
  0xe7   : > { %v520_v12 = vpop.f32.mrf.mxu2  ;;  %v561_v13 = vpop.f32.mrf.mxu3 }
  0xe8   : > { %v441_v15 = vpop.f32.mrf.mxu0  ;;  %v482_v16 = vpop.f32.mrf.mxu1  ;;  %v831_v35 = vmul.f32 1.442695, %v520_v12  ;;  %v833_v41 = vmul.f32 1.442695, %v561_v13 }
  0xe9   : > { %v843_v18 = vmul.f32 1.442695, %v441_v15  ;;  %v845_v19 = vmul.f32 1.442695, %v482_v16  ;;  %v2347_v34 = vpop.eup %2346  ;;  %v3059_v16 = vld [vmem:[%s3831_s3] sm:$0xff] }
  0xea   : > { %v2349_v40 = vpop.eup %2348 }
  0xeb   : > { %2350 = vpow2.f32 %v843_v18 }
  0xec   : > { %2352 = vpow2.f32 %v845_v19 }
  0xed   : > { %2354 = vpow2.f32 %v811_v23 }
  0xee   : > { %2356 = vpow2.f32 %v813_v25 }
  0xef   : > { %v523_v32 = vpop.f32.mrf.mxu2  ;;  %v564_v33 = vpop.f32.mrf.mxu3  ;;  %2358 = vpow2.f32 %v795_v27 }
  0xf0   : > { %v847_v36 = vmul.f32 1.442695, %v523_v32  ;;  %v849_v37 = vmul.f32 1.442695, %v564_v33  ;;  %v3012_v38 = vpop.f32.mrf.mxu0  ;;  %v3014_v39 = vpop.f32.mrf.mxu1  ;;  %2360 = vpow2.f32 %v797_v29 }
  0xf1   : > { %v2351_v48 = vpop.eup %2350 }
  0xf2   : > { %2362 = vpow2.f32 %v847_v36  ;;  %v2353_v52 = vpop.eup %2352  ;;  %948 = vmatpush.msra.mxu0 %v2351_v48  ;;  %v3104_v36 = vld [vmem:[%s3831_s3 + $0x10] sm:$0xff]  ;;  %v870_v48 = vld [vmem:[%s3830_s2 + $0x18] sm:$0xff] }
  0xf3   : > { %2364 = vpow2.f32 %v849_v37  ;;  %v2355_v56 = vpop.eup %2354  ;;  %989 = vmatpush.msra.mxu1 %v2353_v52  ;;  %892 = vperm.xlu2 %2324, %v870_v48  }
  0xf4   : > { %2366 = vpow2.f32 %v831_v35  ;;  %v2357_v60 = vpop.eup %2356  ;;  %949 = vmatpush.msra.mxu0 %v2347_v34 }
  0xf5   : > { %2368 = vpow2.f32 %v833_v41  ;;  %v2359_v62 = vpop.eup %2358  ;;  %990 = vmatpush.msra.mxu1 %v2349_v40 }
  0xf6   : > { %2370 = vpow2.f32 %v815_v49  ;;  %v2361_v0 = vpop.eup %2360  ;;  %950 = vmatpush.msra.mxu0 %v2355_v56 }
  0xf7   : > { %2372 = vpow2.f32 %v817_v53  ;;  %v3028_v2 = vpop.f32.mrf.mxu2  ;;  %v3030_v3 = vpop.f32.mrf.mxu3  ;;  %991 = vmatpush.msra.mxu1 %v2357_v60  ;;  %v739_v60 = vmul.f32 1.442695, %v3012_v38 }
  0xf8   : > { %v2363_v58 = vpop.eup %2362  ;;  %2374 = vpow2.f32 %v799_v57  ;;  %v3033_v59 = vpop.f32.mrf.mxu0  ;;  %951 = vmatpush.msra.mxu0 %v2359_v62  ;;  %v3141_v57 = vld [vmem:[%s3831_s3 + $0x20] sm:$0xff]  ;;  %v869_v62 = vld [vmem:[%s3830_s2 + $0x10] sm:$0xff] }
  0xf9   : > { %v3035_v5 = vpop.f32.mrf.mxu1  ;;  %v2365_v54 = vpop.eup %2364  ;;  %2376 = vpow2.f32 %v801_v61  ;;  %1030 = vmatpush.msra.mxu2 %v2363_v58  ;;  %992 = vmatpush.msra.mxu1 %v2361_v0  ;;  %v755_v61 = vmul.f32 1.442695, %v3033_v59 }
  0xfa   : > { %v2367_v55 = vpop.eup %2366  ;;  %2378 = vpow2.f32 %v783_v63  ;;  %1071 = vmatpush.msra.mxu3 %v2365_v54  ;;  %952 = vmatpush.msra.mxu0 %v3008_v30  ;;  %v3084_v30 = vld [vmem:[%s3831_s3 + $0x8] sm:$0xff]  ;;  %v757_v63 = vmul.f32 1.442695, %v3035_v5 }
  0xfb   : > { %v2369_v8 = vpop.eup %2368  ;;  %2380 = vpow2.f32 %v785_v1  ;;  %1031 = vmatpush.msra.mxu2 %v2367_v55  ;;  %993 = vmatpush.msra.mxu1 %v3010_v31  ;;  %v868_v31 = vld [vmem:[%s3830_s2 + $0x8] sm:$0xff] }
  0xfc   : > { %v2371_v9 = vpop.eup %2370  ;;  %2382 = vpow2.f32 %v767_v4  ;;  %1072 = vmatpush.msra.mxu3 %v2369_v8  ;;  %953 = vmatpush.msra.mxu0 %v3004_v26 }
  0xfd   : > { %v2373_v51 = vpop.eup %2372  ;;  %2384 = vpow2.f32 %v769_v6  ;;  %1032 = vmatpush.msra.mxu2 %v2371_v9  ;;  %994 = vmatpush.msra.mxu1 %v3006_v28  ;;  %v3162_v6 = vld [vmem:[%s3831_s3 + $0x28] sm:$0xff] }
  0xfe   : > { %v2375_v11 = vpop.eup %2374  ;;  %2386 = vpow2.f32 %v751_v7  ;;  %1073 = vmatpush.msra.mxu3 %v2373_v51  ;;  %954 = vmatpush.msra.mxu0 %v2999_v22  ;;  %v867_v22 = vld [vmem:[%s3830_s2] sm:$0xff] }
  0xff   : > { %v2377_v47 = vpop.eup %2376  ;;  %2388 = vpow2.f32 %v753_v50  ;;  %v3046_v12 = vpop.f32.mrf.mxu2  ;;  %1033 = vmatpush.msra.mxu2 %v2375_v11  ;;  %995 = vmatpush.msra.mxu1 %v3002_v24 }
 0x100   : > { %v3048_v42 = vpop.f32.mrf.mxu3  ;;  %v2379_v13 = vpop.eup %2378  ;;  %2390 = vpow2.f32 %v735_v10  ;;  %1074 = vmatpush.msra.mxu3 %v2377_v47  ;;  %955 = vmatpush.msra.mxu0 %v2990_v14 }
 0x101   : > { %v3052_v43 = vpop.f32.mrf.mxu0  ;;  %v3054_v15 = vpop.f32.mrf.mxu1  ;;  %2392 = vpow2.f32 %v737_v46  ;;  %1034 = vmatpush.msra.mxu2 %v2379_v13  ;;  %996 = vmatpush.msra.mxu1 %v2992_v17 }
 0x102   : > { %v2381_v18 = vpop.eup %2380  ;;  %2174 = vmatmul.msk.f32.vlgmr.msra.gmra.mxu0 %vm915_vm2, %v3059_v16  ;;  %2182 = vmatmul.msk.f32.vlgmr.msra.gmra.mxu1 %vm915_vm2, %v3059_v16  ;;  %v771_v38 = vmul.f32 1.442695, %v3052_v43  ;;  %2394 = vpow2.f32 %v739_v60  ;;  %v773_v0 = vmul.f32 1.442695, %v3054_v15 }
 0x103   : > { %v2383_v19 = vpop.eup %2382  ;;  %1075 = vmatpush.msra.mxu3 %v2381_v18  ;;  %877 = vperm.xlu1 %2323, %v867_v22   ;;  %2396 = vpow2.f32 %v755_v61  ;;  %v741_v61 = vmul.f32 1.442695, %v3014_v39 }
 0x104   : > { %v2385_v23 = vpop.eup %2384  ;;  %1035 = vmatpush.msra.mxu2 %v2383_v19  ;;  %882 = vperm.xlu0 %2322, %v868_v31   ;;  %2398 = vpow2.f32 %v757_v63 }
 0x105   : > { %v2387_v14 = vpop.eup %2386  ;;  %1076 = vmatpush.msra.mxu3 %v2385_v23  ;;  %887 = vperm.xlu2 %2324, %v869_v62   ;;  %2400 = vpow2.f32 %v771_v38  ;;  %v3186_v23 = vld [vmem:[%s3831_s3 + $0x30] sm:$0xff] }
 0x106   : > { %v2389_v17 = vpop.eup %2388  ;;  %1036 = vmatpush.msra.mxu2 %v2387_v14  ;;  %2402 = vpow2.f32 %v773_v0  ;;  %v759_v0 = vmul.f32 1.442695, %v3046_v12  ;;  %v745_v12 = vmul.f32 1.442695, %v3030_v3 }
 0x107   : > { %v2391_v24 = vpop.eup %2390  ;;  %1077 = vmatpush.msra.mxu3 %v2389_v17  ;;  %v3073_v26 = vpop.f32.mrf.mxu2 }
 0x108   : > { %v2393_v25 = vpop.eup %2392  ;;  %v3075_v27 = vpop.f32.mrf.mxu3  ;;  %1037 = vmatpush.msra.mxu2 %v2391_v24 }
 0x109   : > { %1078 = vmatpush.msra.mxu3 %v2393_v25  ;;  %v3077_v28 = vpop.f32.mrf.mxu0  ;;  %v3079_v29 = vpop.f32.mrf.mxu1  ;;  %2190 = vmatmul.msk.f32.vlgmr.msra.gmra.mxu2 %vm915_vm2, %v3059_v16  ;;  %v777_v38 = vmul.f32 1.442695, %v3075_v27  ;;  %v743_v27 = vmul.f32 1.442695, %v3028_v2 }
 0x10a   : > { %2198 = vmatmul.msk.f32.vlgmr.msra.gmra.mxu3 %vm915_vm2, %v3059_v16  ;;  %2175 = vmatmul.msk.f32.gmra.mxu0 %vm915_vm2, %v3084_v30  ;;  %v3168_v50 = vpop.eup %2394  ;;  %v787_v43 = vmul.f32 1.442695, %v3077_v28  ;;  %v789_v17 = vmul.f32 1.442695, %v3079_v29 }
 0x10b   : > { %2183 = vmatmul.msk.f32.gmra.mxu1 %vm915_vm2, %v3084_v30  ;;  %v3174_v10 = vpop.eup %2396 }
 0x10c   : > { %v3176_v46 = vpop.eup %2398 }
 0x10d   : > { %v3178_v47 = vpop.eup %2400 }
 0x10e   : > { %v3180_v13 = vpop.eup %2402 }
 0x10f   : > { %v3097_v32 = vpop.f32.mrf.mxu2 }
 0x110   : > { %v3099_v33 = vpop.f32.mrf.mxu3  ;;  %v791_v62 = vmul.f32 1.442695, %v3097_v32  ;;  %v775_v32 = vmul.f32 1.442695, %v3073_v26 }
 0x111   : > { %v596_v34 = vpop.f32.mrf.mxu0  ;;  %v637_v35 = vpop.f32.mrf.mxu1  ;;  %2191 = vmatmul.msk.f32.gmra.mxu2 %vm915_vm2, %v3084_v30  ;;  %v793_v39 = vmul.f32 1.442695, %v3099_v33 }
 0x112   : > { %2199 = vmatmul.msk.f32.gmra.mxu3 %vm915_vm2, %v3084_v30  ;;  %2176 = vmatmul.msk.f32.gmra.mxu0 %vm915_vm2, %v3104_v36  ;;  %v803_v51 = vmul.f32 1.442695, %v596_v34  ;;  %v805_v11 = vmul.f32 1.442695, %v637_v35 }
 0x113   : > { %2184 = vmatmul.msk.f32.gmra.mxu1 %vm915_vm2, %v3104_v36 }
 0x117   : > { %v3114_v37 = vpop.f32.mrf.mxu2 }
 0x118   : > { %v3116_v40 = vpop.f32.mrf.mxu3  ;;  %v807_v48 = vmul.f32 1.442695, %v3114_v37  ;;  %v3210_v37 = vld [vmem:[%s3831_s3 + $0x38] sm:$0xff] }
 0x119   : > { %v599_v41 = vpop.f32.mrf.mxu0  ;;  %v640_v44 = vpop.f32.mrf.mxu1  ;;  %2192 = vmatmul.msk.f32.gmra.mxu2 %vm915_vm2, %v3104_v36 }
 0x11a   : > { %2200 = vmatmul.msk.f32.gmra.mxu3 %vm915_vm2, %v3104_v36  ;;  %2177 = vmatmul.msk.f32.gmra.mxu0 %vm915_vm2, %v3121_v45  ;;  %v819_v8 = vmul.f32 1.442695, %v599_v41  ;;  %v821_v9 = vmul.f32 1.442695, %v640_v44 }
 0x11b   : > { %2185 = vmatmul.msk.f32.gmra.mxu1 %vm915_vm2, %v3121_v45 }
 0x11f   : > { %v3134_v49 = vpop.f32.mrf.mxu2 }
 0x120   : > { %v3136_v52 = vpop.f32.mrf.mxu3  ;;  %v823_v34 = vmul.f32 1.442695, %v3134_v49 }
 0x121   : > { %v602_v53 = vpop.f32.mrf.mxu0  ;;  %v643_v56 = vpop.f32.mrf.mxu1  ;;  %2193 = vmatmul.msk.f32.gmra.mxu2 %vm915_vm2, %v3121_v45  ;;  %v825_v41 = vmul.f32 1.442695, %v3136_v52 }
 0x122   : > { %2201 = vmatmul.msk.f32.gmra.mxu3 %vm915_vm2, %v3121_v45  ;;  %2178 = vmatmul.msk.f32.gmra.mxu0 %vm915_vm2, %v3141_v57  ;;  %v835_v1 = vmul.f32 1.442695, %v602_v53  ;;  %v837_v58 = vmul.f32 1.442695, %v643_v56  ;;  %v809_v56 = vmul.f32 1.442695, %v3116_v40 }
 0x123   : > { %2186 = vmatmul.msk.f32.gmra.mxu1 %vm915_vm2, %v3141_v57 }
 0x124   : > { %2404 = vpow2.f32 %v835_v1  ;;  %v761_v1 = vmul.f32 1.442695, %v3048_v42 }
 0x125   : > { %2406 = vpow2.f32 %v837_v58 }
 0x127   : > { %v684_v4 = vpop.f32.mrf.mxu2 }
 0x128   : > { %v725_v59 = vpop.f32.mrf.mxu3  ;;  %v839_v25 = vmul.f32 1.442695, %v684_v4 }
 0x129   : > { %v605_v5 = vpop.f32.mrf.mxu0  ;;  %v646_v54 = vpop.f32.mrf.mxu1  ;;  %2194 = vmatmul.msk.f32.gmra.mxu2 %vm915_vm2, %v3141_v57  ;;  %v841_v31 = vmul.f32 1.442695, %v725_v59 }
 0x12a   : > { %2202 = vmatmul.msk.f32.gmra.mxu3 %vm915_vm2, %v3141_v57  ;;  %v851_v55 = vmul.f32 1.442695, %v605_v5  ;;  %v853_v7 = vmul.f32 1.442695, %v646_v54  ;;  %2179 = vmatmul.msk.f32.gmra.mxu0 %vm915_vm2, %v3162_v6  ;;  %v2405_v19 = vpop.eup %2404  ;;  %v1333_v54 = vld [vmem:[%s3833_s5 + $0x8] sm:$0xff] }
 0x12b   : > { %2187 = vmatmul.msk.f32.gmra.mxu1 %vm915_vm2, %v3162_v6  ;;  %v2407_v14 = vpop.eup %2406  ;;  %1709 = vperm.xlu0 %2322, %v1333_v54  }
 0x12c   : > { %2408 = vpow2.f32 %v851_v55 }
 0x12d   : > { %2410 = vpow2.f32 %v853_v7 }
 0x12e   : > { %2412 = vpow2.f32 %v819_v8 }
 0x12f   : > { %2414 = vpow2.f32 %v821_v9  ;;  %v687_v15 = vpop.f32.mrf.mxu2 }
 0x130   : > { %v728_v18 = vpop.f32.mrf.mxu3  ;;  %2416 = vpow2.f32 %v803_v51  ;;  %v855_v21 = vmul.f32 1.442695, %v687_v15 }
 0x131   : > { %v857_v22 = vmul.f32 1.442695, %v728_v18  ;;  %2418 = vpow2.f32 %v805_v11  ;;  %2195 = vmatmul.msk.f32.gmra.mxu2 %vm915_vm2, %v3162_v6 }
 0x132   : > { %2203 = vmatmul.msk.f32.gmra.mxu3 %vm915_vm2, %v3162_v6  ;;  %v2409_v24 = vpop.eup %2408  ;;  %2420 = vpow2.f32 %v855_v21  ;;  %2180 = vmatmul.msk.f32.gmra.mxu0 %vm915_vm2, %v3186_v23 }
 0x133   : > { %v2411_v28 = vpop.eup %2410  ;;  %2422 = vpow2.f32 %v857_v22  ;;  %2188 = vmatmul.msk.f32.gmra.mxu1 %vm915_vm2, %v3186_v23  ;;  %1112 = vmatpush.msrb.mxu0 %v2409_v24 }
 0x134   : > { %v2413_v29 = vpop.eup %2412  ;;  %2424 = vpow2.f32 %v787_v43  ;;  %1153 = vmatpush.msrb.mxu1 %v2411_v28 }
 0x135   : > { %v2415_v35 = vpop.eup %2414  ;;  %2426 = vpow2.f32 %v789_v17  ;;  %1113 = vmatpush.msrb.mxu0 %v2405_v19 }
 0x136   : > { %v2417_v44 = vpop.eup %2416  ;;  %2428 = vpow2.f32 %v839_v25  ;;  %1154 = vmatpush.msrb.mxu1 %v2407_v14 }
 0x137   : > { %v2419_v53 = vpop.eup %2418  ;;  %2430 = vpow2.f32 %v841_v31  ;;  %1114 = vmatpush.msrb.mxu0 %v2413_v29 }
 0x138   : > { %v2421_v60 = vpop.eup %2420  ;;  %2432 = vpow2.f32 %v823_v34  ;;  %1155 = vmatpush.msrb.mxu1 %v2415_v35 }
 0x139   : > { %v2423_v49 = vpop.eup %2422  ;;  %2434 = vpow2.f32 %v825_v41  ;;  %2196 = vmatmul.msk.f32.gmra.mxu2 %vm915_vm2, %v3186_v23  ;;  %1115 = vmatpush.msrb.mxu0 %v2417_v44 }
 0x13a   : > { %2204 = vmatmul.msk.f32.gmra.mxu3 %vm915_vm2, %v3186_v23  ;;  %v2425_v40 = vpop.eup %2424  ;;  %2436 = vpow2.f32 %v807_v48  ;;  %1156 = vmatpush.msrb.mxu1 %v2419_v53 }
 0x13b   : > { %v2427_v52 = vpop.eup %2426  ;;  %2438 = vpow2.f32 %v809_v56  ;;  %1194 = vmatpush.msrb.mxu2 %v2421_v60  ;;  %1235 = vmatpush.msrb.mxu3 %v2423_v49 }
 0x13c   : > { %v2429_v63 = vpop.eup %2428  ;;  %2440 = vpow2.f32 %v741_v61  ;;  %2181 = vmatmul.msk.f32.gmra.mxu0 %vm915_vm2, %v3210_v37  ;;  %2189 = vmatmul.msk.f32.gmra.mxu1 %vm915_vm2, %v3210_v37 }
 0x13d   : > { %v2431_v33 = vpop.eup %2430  ;;  %2442 = vpow2.f32 %v791_v62  ;;  %1116 = vmatpush.msrb.mxu0 %v2425_v40  ;;  %1157 = vmatpush.msrb.mxu1 %v2427_v52 }
 0x13e   : > { %v2433_v26 = vpop.eup %2432  ;;  %2444 = vpow2.f32 %v793_v39  ;;  %1195 = vmatpush.msrb.mxu2 %v2429_v63  ;;  %1236 = vmatpush.msrb.mxu3 %v2431_v33 }
 0x13f   : > { %v2435_v58 = vpop.eup %2434  ;;  %2446 = vpow2.f32 %v775_v32  ;;  %1117 = vmatpush.msrb.mxu0 %v3178_v47  ;;  %1158 = vmatpush.msrb.mxu1 %v3180_v13 }
 0x140   : > { %v2437_v4 = vpop.eup %2436  ;;  %2448 = vpow2.f32 %v777_v38  ;;  %1196 = vmatpush.msrb.mxu2 %v2433_v26  ;;  %1237 = vmatpush.msrb.mxu3 %v2435_v58 }
 0x141   : > { %v2439_v59 = vpop.eup %2438  ;;  %2450 = vpow2.f32 %v759_v0  ;;  %1118 = vmatpush.msrb.mxu0 %v3174_v10  ;;  %1159 = vmatpush.msrb.mxu1 %v3176_v46  ;;  %v2717_v10 = vmov 1  }
 0x142   : > { %v2441_v42 = vpop.eup %2440  ;;  %2452 = vpow2.f32 %v761_v1  ;;  %1197 = vmatpush.msrb.mxu2 %v2437_v4  ;;  %1238 = vmatpush.msrb.mxu3 %v2439_v59 }
 0x143   : > { %v2443_v2 = vpop.eup %2442  ;;  %2454 = vpow2.f32 %v743_v27  ;;  %2197 = vmatmul.msk.f32.gmra.mxu2 %vm915_vm2, %v3210_v37  ;;  %2205 = vmatmul.msk.f32.gmra.mxu3 %vm915_vm2, %v3210_v37 }
 0x144   : > { %v2445_v3 = vpop.eup %2444  ;;  %2456 = vpow2.f32 %v745_v12  ;;  %1119 = vmatpush.msrb.mxu0 %v3168_v50  ;;  %1160 = vmatpush.msrb.mxu1 %v2441_v42 }
 0x145   : > { %v2447_v5 = vpop.eup %2446  ;;  %1198 = vmatpush.msrb.mxu2 %v2443_v2  ;;  %1239 = vmatpush.msrb.mxu3 %v2445_v3 }
 0x146   : > { %v2449_v55 = vpop.eup %2448  ;;  %2206 = vmatmul.msk.f32.vlgmr.msrb.gmra.mxu0 %vm915_vm2, %v3059_v16  ;;  %2214 = vmatmul.msk.f32.vlgmr.msrb.gmra.mxu1 %vm915_vm2, %v3059_v16 }
 0x147   : > { %v2451_v7 = vpop.eup %2450  ;;  %1199 = vmatpush.msrb.mxu2 %v2447_v5  ;;  %1240 = vmatpush.msrb.mxu3 %v2449_v55 }
 0x148   : > { %v2453_v8 = vpop.eup %2452  ;;  %2325 = vset.pattern.permute.xlu2 %v2717_v10  ;;  %2326 = vset.pattern.permute.xlu1 %v2717_v10 }
 0x149   : > { %v2455_v50 = vpop.eup %2454  ;;  %1200 = vmatpush.msrb.mxu2 %v2451_v7  ;;  %1241 = vmatpush.msrb.mxu3 %v2453_v8 }
 0x14a   : > { %v2457_v9 = vpop.eup %2456  ;;  %1511 = vperm.xlu2 %2325, %v1333_v54  }
 0x14b   : > { %1201 = vmatpush.msrb.mxu2 %v2455_v50  ;;  %1242 = vmatpush.msrb.mxu3 %v2457_v9 }
 0x14c   : > { %2222 = vmatmul.msk.f32.vlgmr.msrb.gmra.mxu2 %vm915_vm2, %v3059_v16  ;;  %2230 = vmatmul.msk.f32.vlgmr.msrb.gmra.mxu3 %vm915_vm2, %v3059_v16  ;;  %v1332_v16 = vld [vmem:[%s3833_s5] sm:$0xff] }
 0x14d   : > { %1506 = vperm.xlu1 %2326, %v1332_v16   ;;  %v3311_v51 = vpop.permute.xlu2 %892 }
 0x14e   : > { %2207 = vmatmul.msk.f32.gmra.mxu0 %vm915_vm2, %v3084_v30  ;;  %2215 = vmatmul.msk.f32.gmra.mxu1 %vm915_vm2, %v3084_v30 }
 0x152   : > { %2327 = vset.pattern.permute.xlu2 %v2716_v20  ;;  %v3283_v20 = vpop.permute.xlu1 %902 }
 0x153   : > { %1705 = vperm.xlu2 %2327, %v1332_v16  }
 0x154   : > { %2223 = vmatmul.msk.f32.gmra.mxu2 %vm915_vm2, %v3084_v30  ;;  %2231 = vmatmul.msk.f32.gmra.mxu3 %vm915_vm2, %v3084_v30  ;;  %v3285_v30 = vpop.permute.xlu0 %912 }
 0x156   : > { %2208 = vmatmul.msk.f32.gmra.mxu0 %vm915_vm2, %v3104_v36  ;;  %2216 = vmatmul.msk.f32.gmra.mxu1 %vm915_vm2, %v3104_v36 }
 0x15c   : > { %2224 = vmatmul.msk.f32.gmra.mxu2 %vm915_vm2, %v3104_v36  ;;  %2232 = vmatmul.msk.f32.gmra.mxu3 %vm915_vm2, %v3104_v36  ;;  %v3295_v36 = vpop.permute.xlu1 %897 }
 0x15e   : > { %2209 = vmatmul.msk.f32.gmra.mxu0 %vm915_vm2, %v3121_v45  ;;  %2217 = vmatmul.msk.f32.gmra.mxu1 %vm915_vm2, %v3121_v45 }
 0x164   : > { %2225 = vmatmul.msk.f32.gmra.mxu2 %vm915_vm2, %v3121_v45  ;;  %2233 = vmatmul.msk.f32.gmra.mxu3 %vm915_vm2, %v3121_v45  ;;  %v3301_v45 = vpop.permute.xlu0 %907 }
 0x166   : > { %2210 = vmatmul.msk.f32.gmra.mxu0 %vm915_vm2, %v3141_v57  ;;  %2218 = vmatmul.msk.f32.gmra.mxu1 %vm915_vm2, %v3141_v57 }
 0x16c   : > { %2226 = vmatmul.msk.f32.gmra.mxu2 %vm915_vm2, %v3141_v57  ;;  %2234 = vmatmul.msk.f32.gmra.mxu3 %vm915_vm2, %v3141_v57 }
 0x16e   : > { %2211 = vmatmul.msk.f32.gmra.mxu0 %vm915_vm2, %v3162_v6  ;;  %2219 = vmatmul.msk.f32.gmra.mxu1 %vm915_vm2, %v3162_v6 }
 0x174   : > { %2227 = vmatmul.msk.f32.gmra.mxu2 %vm915_vm2, %v3162_v6  ;;  %2235 = vmatmul.msk.f32.gmra.mxu3 %vm915_vm2, %v3162_v6 }
 0x175   : > { %v3313_v46 = vpop.permute.xlu1 %877 }
 0x176   : > { %2212 = vmatmul.msk.f32.gmra.mxu0 %vm915_vm2, %v3186_v23  ;;  %2220 = vmatmul.msk.f32.gmra.mxu1 %vm915_vm2, %v3186_v23  ;;  %v3317_v13 = vpop.permute.xlu0 %882 }
 0x17c   : > { %2228 = vmatmul.msk.f32.gmra.mxu2 %vm915_vm2, %v3186_v23  ;;  %2236 = vmatmul.msk.f32.gmra.mxu3 %vm915_vm2, %v3186_v23  ;;  %v3321_v23 = vpop.permute.xlu2 %887 }
 0x17e   : > { %2213 = vmatmul.msk.f32.gmra.mxu0 %vm915_vm2, %v3210_v37  ;;  %2221 = vmatmul.msk.f32.gmra.mxu1 %vm915_vm2, %v3210_v37 }
 0x17f   : > { %v957_v57 = vpop.f32.mrf.mxu0  ;;  %v998_v6 = vpop.f32.mrf.mxu1 }
 0x180   : > { %v958_v11 = vadd.f32 %v957_v57, %v3313_v46  ;;  %v999_v47 = vadd.f32 %v998_v6, %v3313_v46 }
 0x182   : > { %2458 = vtanh.f32 %v958_v11 }
 0x183   : > { %2460 = vtanh.f32 %v999_v47 }
 0x184   : > { %2229 = vmatmul.msk.f32.gmra.mxu2 %vm915_vm2, %v3210_v37  ;;  %2237 = vmatmul.msk.f32.gmra.mxu3 %vm915_vm2, %v3210_v37 }
 0x187   : > { %v960_v43 = vpop.f32.mrf.mxu0 }
 0x188   : > { %v1001_v15 = vpop.f32.mrf.mxu1  ;;  %v961_v18 = vadd.f32 %v960_v43, %v3317_v13  ;;  %v3323_v14 = vpop.eup %2458 }
 0x189   : > { %v1002_v19 = vadd.f32 %v1001_v15, %v3317_v13  ;;  %v3325_v17 = vpop.eup %2460  ;;  %v1334_v53 = vmul.f32 %v3323_v14, %v3323_v14 }
 0x18a   : > { %2462 = vtanh.f32 %v961_v18  ;;  %v1335_v61 = vmul.f32 %v3325_v17, %v3325_v17 }
 0x18b   : > { %2464 = vtanh.f32 %v1002_v19 }
 0x18c   : > { %v1039_v21 = vpop.f32.mrf.mxu2 }
 0x18d   : > { %v1080_v22 = vpop.f32.mrf.mxu3  ;;  %v1040_v35 = vadd.f32 %v1039_v21, %v3313_v46 }
 0x18e   : > { %v1081_v48 = vadd.f32 %v1080_v22, %v3313_v46 }
 0x18f   : > { %v963_v24 = vpop.f32.mrf.mxu0 }
 0x190   : > { %v1004_v25 = vpop.f32.mrf.mxu1  ;;  %v3327_v28 = vpop.eup %2462  ;;  %v964_v31 = vadd.f32 %v963_v24, %v3321_v23 }
 0x191   : > { %v1005_v29 = vadd.f32 %v1004_v25, %v3321_v23  ;;  %v3331_v34 = vpop.eup %2464  ;;  %v1342_v56 = vmul.f32 %v3327_v28, %v3327_v28 }
 0x192   : > { %2466 = vtanh.f32 %v964_v31  ;;  %v1343_v49 = vmul.f32 %v3331_v34, %v3331_v34 }
 0x193   : > { %2468 = vtanh.f32 %v1005_v29  ;;  %v1398_v39 = vadd.f32 %v1342_v56, %v1334_v53 }
 0x194   : > { %v1042_v41 = vpop.f32.mrf.mxu2  ;;  %2470 = vtanh.f32 %v1040_v35  ;;  %v1411_v38 = vadd.f32 %v1343_v49, %v1335_v61 }
 0x195   : > { %v1083_v44 = vpop.f32.mrf.mxu3  ;;  %v1043_v60 = vadd.f32 %v1042_v41, %v3317_v13  ;;  %2472 = vtanh.f32 %v1081_v48 }
 0x196   : > { %v1084_v62 = vadd.f32 %v1083_v44, %v3317_v13 }
 0x197   : > { %v966_v37 = vpop.f32.mrf.mxu0  ;;  %2474 = vtanh.f32 %v1043_v60 }
 0x198   : > { %v1007_v40 = vpop.f32.mrf.mxu1  ;;  %v3345_v52 = vpop.eup %2466  ;;  %v967_v32 = vadd.f32 %v966_v37, %v3311_v51  ;;  %2476 = vtanh.f32 %v1084_v62 }
 0x199   : > { %v1008_v63 = vadd.f32 %v1007_v40, %v3311_v51  ;;  %v3349_v33 = vpop.eup %2468  ;;  %v1350_v0 = vmul.f32 %v3345_v52, %v3345_v52 }
 0x19a   : > { %2478 = vtanh.f32 %v967_v32  ;;  %v1351_v26 = vmul.f32 %v3349_v33, %v3349_v33  ;;  %v3355_v4 = vpop.eup %2470 }
 0x19b   : > { %2480 = vtanh.f32 %v1008_v63  ;;  %v1399_v27 = vadd.f32 %v1398_v39, %v1350_v0  ;;  %v3359_v2 = vpop.eup %2472  ;;  %v1336_v43 = vmul.f32 %v3355_v4, %v3355_v4 }
 0x19c   : > { %v1045_v1 = vpop.f32.mrf.mxu2  ;;  %v1412_v42 = vadd.f32 %v1411_v38, %v1351_v26  ;;  %v1337_v22 = vmul.f32 %v3359_v2, %v3359_v2 }
 0x19d   : > { %v1086_v58 = vpop.f32.mrf.mxu3  ;;  %v1046_v12 = vadd.f32 %v1045_v1, %v3321_v23  ;;  %v3361_v3 = vpop.eup %2474 }
 0x19e   : > { %v1087_v59 = vadd.f32 %v1086_v58, %v3321_v23  ;;  %v3363_v5 = vpop.eup %2476  ;;  %v1344_v10 = vmul.f32 %v3361_v3, %v3361_v3 }
 0x19f   : > { %2482 = vtanh.f32 %v1046_v12  ;;  %v969_v54 = vpop.f32.mrf.mxu0  ;;  %v1345_v57 = vmul.f32 %v3363_v5, %v3363_v5 }
 0x1a0   : > { %v1010_v55 = vpop.f32.mrf.mxu1  ;;  %2484 = vtanh.f32 %v1087_v59  ;;  %v3365_v7 = vpop.eup %2478  ;;  %v970_v8 = vadd.f32 %v969_v54, %v3295_v36  ;;  %v1424_v29 = vadd.f32 %v1344_v10, %v1336_v43 }
 0x1a1   : > { %v1011_v50 = vadd.f32 %v1010_v55, %v3295_v36  ;;  %v3369_v9 = vpop.eup %2480  ;;  %v1358_v16 = vmul.f32 %v3365_v7, %v3365_v7  ;;  %v1437_v41 = vadd.f32 %v1345_v57, %v1337_v22 }
 0x1a2   : > { %2486 = vtanh.f32 %v970_v8  ;;  %v1359_v6 = vmul.f32 %v3369_v9, %v3369_v9 }
 0x1a3   : > { %2488 = vtanh.f32 %v1011_v50  ;;  %v1400_v15 = vadd.f32 %v1399_v27, %v1358_v16 }
 0x1a4   : > { %v1048_v11 = vpop.f32.mrf.mxu2  ;;  %v1413_v24 = vadd.f32 %v1412_v42, %v1359_v6 }
 0x1a5   : > { %v1089_v47 = vpop.f32.mrf.mxu3  ;;  %v3381_v18 = vpop.eup %2482  ;;  %v1049_v19 = vadd.f32 %v1048_v11, %v3311_v51 }
 0x1a6   : > { %v1090_v21 = vadd.f32 %v1089_v47, %v3311_v51  ;;  %v3387_v25 = vpop.eup %2484  ;;  %v1352_v31 = vmul.f32 %v3381_v18, %v3381_v18 }
 0x1a7   : > { %2490 = vtanh.f32 %v1049_v19  ;;  %v1353_v35 = vmul.f32 %v3387_v25, %v3387_v25  ;;  %v972_v44 = vpop.f32.mrf.mxu0 }
 0x1a8   : > { %v1013_v48 = vpop.f32.mrf.mxu1  ;;  %2492 = vtanh.f32 %v1090_v21  ;;  %v1425_v53 = vadd.f32 %v1424_v29, %v1352_v31  ;;  %v3393_v56 = vpop.eup %2486  ;;  %v973_v60 = vadd.f32 %v972_v44, %v3283_v20 }
 0x1a9   : > { %v1014_v61 = vadd.f32 %v1013_v48, %v3283_v20  ;;  %v1438_v49 = vadd.f32 %v1437_v41, %v1353_v35  ;;  %v3397_v62 = vpop.eup %2488  ;;  %v1366_v37 = vmul.f32 %v3393_v56, %v3393_v56 }
 0x1aa   : > { %2494 = vtanh.f32 %v973_v60  ;;  %v1367_v40 = vmul.f32 %v3397_v62, %v3397_v62 }
 0x1ab   : > { %2496 = vtanh.f32 %v1014_v61  ;;  %v1401_v63 = vadd.f32 %v1400_v15, %v1366_v37 }
 0x1ac   : > { %v1051_v39 = vpop.f32.mrf.mxu2  ;;  %v1414_v1 = vadd.f32 %v1413_v24, %v1367_v40 }
 0x1ad   : > { %v1092_v32 = vpop.f32.mrf.mxu3  ;;  %v3403_v38 = vpop.eup %2490  ;;  %v1052_v0 = vadd.f32 %v1051_v39, %v3295_v36 }
 0x1ae   : > { %v1093_v26 = vadd.f32 %v1092_v32, %v3295_v36  ;;  %v3407_v58 = vpop.eup %2492  ;;  %v1360_v27 = vmul.f32 %v3403_v38, %v3403_v38 }
 0x1af   : > { %2498 = vtanh.f32 %v1052_v0  ;;  %v1361_v12 = vmul.f32 %v3407_v58, %v3407_v58  ;;  %v975_v59 = vpop.f32.mrf.mxu0 }
 0x1b0   : > { %2500 = vtanh.f32 %v1093_v26  ;;  %v1016_v42 = vpop.f32.mrf.mxu1  ;;  %v1426_v54 = vadd.f32 %v1425_v53, %v1360_v27  ;;  %v3413_v55 = vpop.eup %2494  ;;  %v976_v8 = vadd.f32 %v975_v59, %v3301_v45 }
 0x1b1   : > { %v1017_v50 = vadd.f32 %v1016_v42, %v3301_v45  ;;  %v1439_v10 = vadd.f32 %v1438_v49, %v1361_v12  ;;  %v3417_v16 = vpop.eup %2496  ;;  %v1374_v57 = vmul.f32 %v3413_v55, %v3413_v55 }
 0x1b2   : > { %v1375_v6 = vmul.f32 %v3417_v16, %v3417_v16  ;;  %2502 = vtanh.f32 %v976_v8 }
 0x1b3   : > { %2504 = vtanh.f32 %v1017_v50  ;;  %v1402_v43 = vadd.f32 %v1401_v63, %v1374_v57 }
 0x1b4   : > { %v1054_v11 = vpop.f32.mrf.mxu2  ;;  %v1415_v22 = vadd.f32 %v1414_v1, %v1375_v6 }
 0x1b5   : > { %v1095_v47 = vpop.f32.mrf.mxu3  ;;  %v3423_v15 = vpop.eup %2498  ;;  %v1055_v19 = vadd.f32 %v1054_v11, %v3283_v20 }
 0x1b6   : > { %v1096_v21 = vadd.f32 %v1095_v47, %v3283_v20  ;;  %v3427_v24 = vpop.eup %2500  ;;  %v1368_v31 = vmul.f32 %v3423_v15, %v3423_v15 }
 0x1b7   : > { %v1369_v29 = vmul.f32 %v3427_v24, %v3427_v24  ;;  %2506 = vtanh.f32 %v1055_v19 }
 0x1b8   : > { %v1427_v35 = vadd.f32 %v1426_v54, %v1368_v31  ;;  %2508 = vtanh.f32 %v1096_v21  ;;  %v2503_v41 = vpop.eup %2502 }
 0x1b9   : > { %v1440_v44 = vadd.f32 %v1439_v10, %v1369_v29  ;;  %v978_v48 = vpop.f32.mrf.mxu0  ;;  %v1019_v53 = vpop.f32.mrf.mxu1  ;;  %v1382_v61 = vmul.f32 %v2503_v41, %v2503_v41 }
 0x1ba   : > { %v2505_v60 = vpop.eup %2504  ;;  %v979_v49 = vadd.f32 %v978_v48, %v3285_v30  ;;  %v1020_v37 = vadd.f32 %v1019_v53, %v3285_v30 }
 0x1bb   : > { %v1383_v40 = vmul.f32 %v2505_v60, %v2505_v60  ;;  %v1403_v39 = vadd.f32 %v1402_v43, %v1382_v61 }
 0x1bc   : > { %2510 = vtanh.f32 %v979_v49  ;;  %v1057_v32 = vpop.f32.mrf.mxu2 }
 0x1bd   : > { %v1098_v63 = vpop.f32.mrf.mxu3  ;;  %v3435_v0 = vpop.eup %2506  ;;  %2512 = vtanh.f32 %v1020_v37  ;;  %v1416_v26 = vadd.f32 %v1415_v22, %v1383_v40  ;;  %v1058_v1 = vadd.f32 %v1057_v32, %v3301_v45 }
 0x1be   : > { %v1099_v27 = vadd.f32 %v1098_v63, %v3301_v45  ;;  %v3439_v12 = vpop.eup %2508  ;;  %v1376_v59 = vmul.f32 %v3435_v0, %v3435_v0 }
 0x1bf   : > { %v1377_v42 = vmul.f32 %v3439_v12, %v3439_v12  ;;  %2514 = vtanh.f32 %v1058_v1 }
 0x1c0   : > { %v1428_v54 = vadd.f32 %v1427_v35, %v1376_v59  ;;  %2516 = vtanh.f32 %v1099_v27 }
 0x1c1   : > { %v1441_v8 = vadd.f32 %v1440_v44, %v1377_v42 }
 0x1c2   : > { %v2511_v50 = vpop.eup %2510 }
 0x1c3   : > { %v2513_v10 = vpop.eup %2512  ;;  %v1390_v57 = vmul.f32 %v2511_v50, %v2511_v50  ;;  %v1121_v6 = vpop.f32.mrf.mxu0  ;;  %1528 = vmatpush.msra.mxu0 %v2511_v50 }
 0x1c4   : > { %v1162_v11 = vpop.f32.mrf.mxu1  ;;  %v1391_v47 = vmul.f32 %v2513_v10, %v2513_v10  ;;  %1551 = vmatpush.msra.mxu1 %v2513_v10  ;;  %v1122_v61 = vadd.f32 %v1121_v6, %v3313_v46  ;;  %v3509_v6 = vld [vmem:[%s3832_s4 + $0x8] sm:$0xff] }
 0x1c5   : > { %v2515_v43 = vpop.eup %2514  ;;  %v3445_v19 = vadd.f32 %v1403_v39, %v1390_v57  ;;  %1529 = vmatpush.msra.mxu0 %v2503_v41  ;;  %v1163_v37 = vadd.f32 %v1162_v11, %v3313_v46 }
 0x1c6   : > { %v2517_v21 = vpop.eup %2516  ;;  %v3447_v22 = vadd.f32 %v1416_v26, %v1391_v47  ;;  %v1384_v31 = vmul.f32 %v2515_v43, %v2515_v43  ;;  %v1060_v29 = vpop.f32.mrf.mxu2  ;;  %1552 = vmatpush.msra.mxu1 %v2505_v60 }
 0x1c7   : > { %v1101_v35 = vpop.f32.mrf.mxu3  ;;  %v1385_v44 = vmul.f32 %v2517_v21, %v2517_v21  ;;  %v1061_v48 = vadd.f32 %v1060_v29, %v3285_v30  ;;  %1530 = vmatpush.msra.mxu0 %v3413_v55 }
 0x1c8   : > { %v1429_v53 = vadd.f32 %v1428_v54, %v1384_v31  ;;  %v1102_v49 = vadd.f32 %v1101_v35, %v3285_v30  ;;  %1553 = vmatpush.msra.mxu1 %v3417_v16 }
 0x1c9   : > { %v1442_v41 = vadd.f32 %v1441_v8, %v1385_v44  ;;  %2518 = vtanh.f32 %v1061_v48  ;;  %1531 = vmatpush.msra.mxu0 %v3393_v56 }
 0x1ca   : > { %2520 = vtanh.f32 %v1102_v49  ;;  %1554 = vmatpush.msra.mxu1 %v3397_v62 }
 0x1cb   : > { %v1124_v60 = vpop.f32.mrf.mxu0  ;;  %1532 = vmatpush.msra.mxu0 %v3365_v7  ;;  %2522 = vtanh.f32 %v1122_v61 }
 0x1cc   : > { %v1165_v40 = vpop.f32.mrf.mxu1  ;;  %v1125_v55 = vadd.f32 %v1124_v60, %v3317_v13  ;;  %1555 = vmatpush.msra.mxu1 %v3369_v9  ;;  %2524 = vtanh.f32 %v1163_v37  ;;  %v3468_v9 = vld [vmem:[%s3832_s4] sm:$0xff] }
 0x1cd   : > { %v1166_v39 = vadd.f32 %v1165_v40, %v3317_v13  ;;  %1533 = vmatpush.msra.mxu0 %v3345_v52 }
 0x1ce   : > { %2526 = vtanh.f32 %v1125_v55  ;;  %1556 = vmatpush.msra.mxu1 %v3349_v33 }
 0x1cf   : > { %v2519_v56 = vpop.eup %2518  ;;  %2528 = vtanh.f32 %v1166_v39  ;;  %v1203_v62 = vpop.f32.mrf.mxu2  ;;  %1534 = vmatpush.msra.mxu0 %v3327_v28 }
 0x1d0   : > { %v1244_v16 = vpop.f32.mrf.mxu3  ;;  %v2521_v7 = vpop.eup %2520  ;;  %v1392_v32 = vmul.f32 %v2519_v56, %v2519_v56  ;;  %1557 = vmatpush.msra.mxu1 %v3331_v34  ;;  %1574 = vmatpush.msra.mxu2 %v2519_v56  ;;  %v1204_v42 = vadd.f32 %v1203_v62, %v3313_v46 }
 0x1d1   : > { %v1393_v52 = vmul.f32 %v2521_v7, %v2521_v7  ;;  %1597 = vmatpush.msra.mxu3 %v2521_v7  ;;  %1535 = vmatpush.msra.mxu0 %v3323_v14  ;;  %v3471_v33 = vpop.eup %2522  ;;  %v1245_v50 = vadd.f32 %v1244_v16, %v3313_v46 }
 0x1d2   : > { %v3473_v63 = vadd.f32 %v1429_v53, %v1392_v32  ;;  %1558 = vmatpush.msra.mxu1 %v3325_v17  ;;  %1575 = vmatpush.msra.mxu2 %v2515_v43  ;;  %v3476_v28 = vpop.eup %2524  ;;  %v1338_v54 = vmul.f32 %v3471_v33, %v3471_v33 }
 0x1d3   : > { %v3478_v34 = vadd.f32 %v1442_v41, %v1393_v52  ;;  %v1127_v26 = vpop.f32.mrf.mxu0  ;;  %1598 = vmatpush.msra.mxu3 %v2517_v21  ;;  %2238 = vmatmul.msk.f32.vlgmr.msra.gmra.mxu0 %vm915_vm2, %v3468_v9 }
 0x1d4   : > { %v1168_v1 = vpop.f32.mrf.mxu1  ;;  %v3482_v27 = vpop.eup %2526  ;;  %v1128_v14 = vadd.f32 %v1127_v26, %v3321_v23  ;;  %2240 = vmatmul.msk.f32.vlgmr.msra.gmra.mxu1 %vm915_vm2, %v3468_v9  ;;  %1576 = vmatpush.msra.mxu2 %v3435_v0 }
 0x1d5   : > { %v1169_v59 = vadd.f32 %v1168_v1, %v3321_v23  ;;  %v3489_v17 = vpop.eup %2528  ;;  %1599 = vmatpush.msra.mxu3 %v3439_v12  ;;  %v1346_v8 = vmul.f32 %v3482_v27, %v3482_v27  ;;  %v1339_v12 = vmul.f32 %v3476_v28, %v3476_v28 }
 0x1d6   : > { %2530 = vtanh.f32 %v1128_v14  ;;  %1577 = vmatpush.msra.mxu2 %v3423_v15  ;;  %v1347_v57 = vmul.f32 %v3489_v17, %v3489_v17 }
 0x1d7   : > { %2532 = vtanh.f32 %v1169_v59  ;;  %v1206_v10 = vpop.f32.mrf.mxu2  ;;  %1600 = vmatpush.msra.mxu3 %v3427_v24  ;;  %v1450_v24 = vadd.f32 %v1346_v8, %v1338_v54 }
 0x1d8   : > { %v1247_v0 = vpop.f32.mrf.mxu3  ;;  %v1207_v15 = vadd.f32 %v1206_v10, %v3317_v13  ;;  %1578 = vmatpush.msra.mxu2 %v3403_v38  ;;  %2534 = vtanh.f32 %v1204_v42  ;;  %v1463_v43 = vadd.f32 %v1347_v57, %v1339_v12 }
 0x1d9   : > { %v1248_v46 = vadd.f32 %v1247_v0, %v3317_v13  ;;  %1601 = vmatpush.msra.mxu3 %v3407_v58  ;;  %2536 = vtanh.f32 %v1245_v50 }
 0x1da   : > { %1579 = vmatpush.msra.mxu2 %v3381_v18  ;;  %2538 = vtanh.f32 %v1207_v15 }
 0x1db   : > { %v1130_v11 = vpop.f32.mrf.mxu0  ;;  %1602 = vmatpush.msra.mxu3 %v3387_v25  ;;  %2239 = vmatmul.msk.f32.gmra.mxu0 %vm915_vm2, %v3509_v6  ;;  %2540 = vtanh.f32 %v1248_v46 }
 0x1dc   : > { %v1171_v47 = vpop.f32.mrf.mxu1  ;;  %v3517_v38 = vpop.eup %2530  ;;  %v1131_v13 = vadd.f32 %v1130_v11, %v3311_v51  ;;  %2241 = vmatmul.msk.f32.gmra.mxu1 %vm915_vm2, %v3509_v6  ;;  %1580 = vmatpush.msra.mxu2 %v3361_v3 }
 0x1dd   : > { %v1172_v58 = vadd.f32 %v1171_v47, %v3311_v51  ;;  %v3524_v18 = vpop.eup %2532  ;;  %v1354_v25 = vmul.f32 %v3517_v38, %v3517_v38  ;;  %1603 = vmatpush.msra.mxu3 %v3363_v5 }
 0x1de   : > { %v1355_v21 = vmul.f32 %v3524_v18, %v3524_v18  ;;  %2542 = vtanh.f32 %v1131_v13  ;;  %1581 = vmatpush.msra.mxu2 %v3355_v4  ;;  %v3535_v3 = vpop.eup %2534 }
 0x1df   : > { %v1451_v31 = vadd.f32 %v1450_v24, %v1354_v25  ;;  %2544 = vtanh.f32 %v1172_v58  ;;  %v1209_v29 = vpop.f32.mrf.mxu2  ;;  %1604 = vmatpush.msra.mxu3 %v3359_v2  ;;  %2242 = vmatmul.msk.f32.vlgmr.msra.gmra.mxu2 %vm915_vm2, %v3468_v9  ;;  %v3541_v4 = vpop.eup %2536  ;;  %v1340_v62 = vmul.f32 %v3535_v3, %v3535_v3 }
 0x1e0   : > { %v1250_v35 = vpop.f32.mrf.mxu3  ;;  %v1464_v44 = vadd.f32 %v1463_v43, %v1355_v21  ;;  %v1210_v5 = vadd.f32 %v1209_v29, %v3321_v23  ;;  %2244 = vmatmul.msk.f32.vlgmr.msra.gmra.mxu3 %vm915_vm2, %v3468_v9  ;;  %v3543_v53 = vpop.eup %2538  ;;  %v1341_v26 = vmul.f32 %v3541_v4, %v3541_v4 }
 0x1e1   : > { %v1251_v48 = vadd.f32 %v1250_v35, %v3321_v23  ;;  %v3545_v61 = vpop.eup %2540  ;;  %v1348_v40 = vmul.f32 %v3543_v53, %v3543_v53 }
 0x1e2   : > { %2546 = vtanh.f32 %v1210_v5  ;;  %v1349_v39 = vmul.f32 %v3545_v61, %v3545_v61 }
 0x1e3   : > { %2548 = vtanh.f32 %v1251_v48  ;;  %v1133_v2 = vpop.f32.mrf.mxu0  ;;  %v1476_v54 = vadd.f32 %v1348_v40, %v1340_v62 }
 0x1e4   : > { %v1174_v49 = vpop.f32.mrf.mxu1  ;;  %v3547_v41 = vpop.eup %2542  ;;  %v1134_v37 = vadd.f32 %v1133_v2, %v3295_v36  ;;  %v1489_v50 = vadd.f32 %v1349_v39, %v1341_v26 }
 0x1e5   : > { %v1175_v60 = vadd.f32 %v1174_v49, %v3295_v36  ;;  %v3551_v23 = vpop.eup %2544  ;;  %v1362_v55 = vmul.f32 %v3547_v41, %v3547_v41 }
 0x1e6   : > { %v1363_v56 = vmul.f32 %v3551_v23, %v3551_v23  ;;  %2550 = vtanh.f32 %v1134_v37 }
 0x1e7   : > { %v1452_v16 = vadd.f32 %v1451_v31, %v1362_v55  ;;  %2552 = vtanh.f32 %v1175_v60  ;;  %v1212_v7 = vpop.f32.mrf.mxu2  ;;  %2243 = vmatmul.msk.f32.gmra.mxu2 %vm915_vm2, %v3509_v6 }
 0x1e8   : > { %v1253_v32 = vpop.f32.mrf.mxu3  ;;  %v3565_v52 = vpop.eup %2546  ;;  %v1465_v1 = vadd.f32 %v1464_v44, %v1363_v56  ;;  %v1213_v14 = vadd.f32 %v1212_v7, %v3311_v51  ;;  %2245 = vmatmul.msk.f32.gmra.mxu3 %vm915_vm2, %v3509_v6 }
 0x1e9   : > { %v1254_v59 = vadd.f32 %v1253_v32, %v3311_v51  ;;  %v3573_v42 = vpop.eup %2548  ;;  %v1356_v8 = vmul.f32 %v3565_v52, %v3565_v52 }
 0x1ea   : > { %v1357_v10 = vmul.f32 %v3573_v42, %v3573_v42  ;;  %2554 = vtanh.f32 %v1213_v14 }
 0x1eb   : > { %v1477_v0 = vadd.f32 %v1476_v54, %v1356_v8  ;;  %2556 = vtanh.f32 %v1254_v59  ;;  %v1136_v12 = vpop.f32.mrf.mxu0 }
 0x1ec   : > { %v1177_v57 = vpop.f32.mrf.mxu1  ;;  %v3579_v15 = vpop.eup %2550  ;;  %v1490_v51 = vadd.f32 %v1489_v50, %v1357_v10  ;;  %v1137_v46 = vadd.f32 %v1136_v12, %v3283_v20 }
 0x1ed   : > { %v1178_v24 = vadd.f32 %v1177_v57, %v3283_v20  ;;  %v3583_v11 = vpop.eup %2552  ;;  %v1370_v47 = vmul.f32 %v3579_v15, %v3579_v15 }
 0x1ee   : > { %v1371_v43 = vmul.f32 %v3583_v11, %v3583_v11  ;;  %2558 = vtanh.f32 %v1137_v46 }
 0x1ef   : > { %v1453_v13 = vadd.f32 %v1452_v16, %v1370_v47  ;;  %2560 = vtanh.f32 %v1178_v24  ;;  %v1215_v58 = vpop.f32.mrf.mxu2 }
 0x1f0   : > { %v1256_v25 = vpop.f32.mrf.mxu3  ;;  %v3589_v21 = vpop.eup %2554  ;;  %v1466_v31 = vadd.f32 %v1465_v1, %v1371_v43  ;;  %v1216_v29 = vadd.f32 %v1215_v58, %v3295_v36 }
 0x1f1   : > { %v1257_v35 = vadd.f32 %v1256_v25, %v3295_v36  ;;  %v3593_v44 = vpop.eup %2556  ;;  %v1364_v5 = vmul.f32 %v3589_v21, %v3589_v21 }
 0x1f2   : > { %v1365_v48 = vmul.f32 %v3593_v44, %v3593_v44  ;;  %2562 = vtanh.f32 %v1216_v29 }
 0x1f3   : > { %v1478_v2 = vadd.f32 %v1477_v0, %v1364_v5  ;;  %2564 = vtanh.f32 %v1257_v35  ;;  %v1139_v49 = vpop.f32.mrf.mxu0 }
 0x1f4   : > { %v1180_v37 = vpop.f32.mrf.mxu1  ;;  %v3599_v60 = vpop.eup %2558  ;;  %v1491_v40 = vadd.f32 %v1490_v51, %v1365_v48  ;;  %v1140_v55 = vadd.f32 %v1139_v49, %v3301_v45 }
 0x1f5   : > { %v1181_v36 = vadd.f32 %v1180_v37, %v3301_v45  ;;  %v2561_v39 = vpop.eup %2560  ;;  %v1378_v56 = vmul.f32 %v3599_v60, %v3599_v60 }
 0x1f6   : > { %v1379_v62 = vmul.f32 %v2561_v39, %v2561_v39  ;;  %2566 = vtanh.f32 %v1140_v55 }
 0x1f7   : > { %v1454_v16 = vadd.f32 %v1453_v13, %v1378_v56  ;;  %2568 = vtanh.f32 %v1181_v36  ;;  %v1218_v7 = vpop.f32.mrf.mxu2 }
 0x1f8   : > { %v1259_v32 = vpop.f32.mrf.mxu3  ;;  %v3605_v26 = vpop.eup %2562  ;;  %v1467_v1 = vadd.f32 %v1466_v31, %v1379_v62  ;;  %v1219_v14 = vadd.f32 %v1218_v7, %v3283_v20 }
 0x1f9   : > { %v1260_v59 = vadd.f32 %v1259_v32, %v3283_v20  ;;  %v3609_v54 = vpop.eup %2564  ;;  %v1372_v8 = vmul.f32 %v3605_v26, %v3605_v26 }
 0x1fa   : > { %v1373_v50 = vmul.f32 %v3609_v54, %v3609_v54  ;;  %2570 = vtanh.f32 %v1219_v14 }
 0x1fb   : > { %v1479_v10 = vadd.f32 %v1478_v2, %v1372_v8  ;;  %2572 = vtanh.f32 %v1260_v59  ;;  %v1142_v0 = vpop.f32.mrf.mxu0 }
 0x1fc   : > { %v1183_v12 = vpop.f32.mrf.mxu1  ;;  %v2567_v57 = vpop.eup %2566  ;;  %v1492_v51 = vadd.f32 %v1491_v40, %v1373_v50  ;;  %v1143_v46 = vadd.f32 %v1142_v0, %v3285_v30 }
 0x1fd   : > { %v1184_v24 = vadd.f32 %v1183_v12, %v3285_v30  ;;  %v2569_v20 = vpop.eup %2568  ;;  %v1386_v47 = vmul.f32 %v2567_v57, %v2567_v57 }
 0x1fe   : > { %v1387_v43 = vmul.f32 %v2569_v20, %v2569_v20  ;;  %2574 = vtanh.f32 %v1143_v46 }
 0x1ff   : > { %v1455_v13 = vadd.f32 %v1454_v16, %v1386_v47  ;;  %2576 = vtanh.f32 %v1184_v24  ;;  %v1221_v58 = vpop.f32.mrf.mxu2 }
 0x200   : > { %v1262_v25 = vpop.f32.mrf.mxu3  ;;  %v2571_v31 = vpop.eup %2570  ;;  %v1468_v29 = vadd.f32 %v1467_v1, %v1387_v43  ;;  %v1222_v35 = vadd.f32 %v1221_v58, %v3301_v45 }
 0x201   : > { %v1263_v5 = vadd.f32 %v1262_v25, %v3301_v45  ;;  %v2573_v48 = vpop.eup %2572  ;;  %v1380_v2 = vmul.f32 %v2571_v31, %v2571_v31 }
 0x202   : > { %v1381_v49 = vmul.f32 %v2573_v48, %v2573_v48  ;;  %2578 = vtanh.f32 %v1222_v35 }
 0x203   : > { %v1480_v37 = vadd.f32 %v1479_v10, %v1380_v2  ;;  %2580 = vtanh.f32 %v1263_v5 }
 0x204   : > { %v2575_v40 = vpop.eup %2574  ;;  %v1493_v55 = vadd.f32 %v1492_v51, %v1381_v49 }
 0x205   : > { %v2577_v36 = vpop.eup %2576  ;;  %v1394_v56 = vmul.f32 %v2575_v40, %v2575_v40  ;;  %1620 = vmatpush.msrb.mxu0 %v2575_v40 }
 0x206   : > { %v1395_v62 = vmul.f32 %v2577_v36, %v2577_v36  ;;  %1643 = vmatpush.msrb.mxu1 %v2577_v36 }
 0x207   : > { %v3619_v16 = vadd.f32 %v1455_v13, %v1394_v56  ;;  %v1224_v7 = vpop.f32.mrf.mxu2  ;;  %1621 = vmatpush.msrb.mxu0 %v2567_v57 }
 0x208   : > { %v1265_v32 = vpop.f32.mrf.mxu3  ;;  %v2579_v1 = vpop.eup %2578  ;;  %v3621_v45 = vadd.f32 %v1468_v29, %v1395_v62  ;;  %v1225_v14 = vadd.f32 %v1224_v7, %v3285_v30  ;;  %1644 = vmatpush.msrb.mxu1 %v2569_v20 }
 0x209   : > { %v1266_v59 = vadd.f32 %v1265_v32, %v3285_v30  ;;  %v2581_v8 = vpop.eup %2580  ;;  %v1388_v50 = vmul.f32 %v2579_v1, %v2579_v1  ;;  %1622 = vmatpush.msrb.mxu0 %v3599_v60  ;;  %v3684_v20 = vpop.permute.xlu0 %1709 }
 0x20a   : > { %v1389_v10 = vmul.f32 %v2581_v8, %v2581_v8  ;;  %2582 = vtanh.f32 %v1225_v14  ;;  %1645 = vmatpush.msrb.mxu1 %v2561_v39 }
 0x20b   : > { %v1481_v0 = vadd.f32 %v1480_v37, %v1388_v50  ;;  %2584 = vtanh.f32 %v1266_v59  ;;  %1623 = vmatpush.msrb.mxu0 %v3579_v15 }
 0x20c   : > { %v1494_v12 = vadd.f32 %v1493_v55, %v1389_v10  ;;  %1646 = vmatpush.msrb.mxu1 %v3583_v11 }
 0x20d   : > { %1624 = vmatpush.msrb.mxu0 %v3547_v41 }
 0x20e   : > { %1647 = vmatpush.msrb.mxu1 %v3551_v23  ;;  %v1431_v23 = vrot.slane %v3473_v63, 4 }
 0x20f   : > { %1625 = vmatpush.msrb.mxu0 %v3517_v38 }
 0x210   : > { %v2583_v30 = vpop.eup %2582  ;;  %1648 = vmatpush.msrb.mxu1 %v3524_v18 }
 0x211   : > { %v2585_v60 = vpop.eup %2584  ;;  %v1396_v57 = vmul.f32 %v2583_v30, %v2583_v30  ;;  %1626 = vmatpush.msrb.mxu0 %v3482_v27  ;;  %1666 = vmatpush.msrb.mxu2 %v2583_v30 }
 0x212   : > { %v1397_v39 = vmul.f32 %v2585_v60, %v2585_v60  ;;  %1649 = vmatpush.msrb.mxu1 %v3489_v17  ;;  %1689 = vmatpush.msrb.mxu3 %v2585_v60 }
 0x213   : > { %v3634_v15 = vadd.f32 %v1481_v0, %v1396_v57  ;;  %1627 = vmatpush.msrb.mxu0 %v3471_v33  ;;  %1667 = vmatpush.msrb.mxu2 %v2579_v1  ;;  %v1405_v33 = vrot.slane %v3445_v19, 4 }
 0x214   : > { %v3637_v41 = vadd.f32 %v1494_v12, %v1397_v39  ;;  %1650 = vmatpush.msrb.mxu1 %v3476_v28  ;;  %1690 = vmatpush.msrb.mxu3 %v2581_v8  ;;  %v1418_v28 = vrot.slane %v3447_v22, 4 }
 0x215   : > { %2246 = vmatmul.msk.f32.vlgmr.msrb.gmra.mxu0 %vm915_vm2, %v3468_v9  ;;  %2248 = vmatmul.msk.f32.vlgmr.msrb.gmra.mxu1 %vm915_vm2, %v3468_v9  ;;  %v1406_v27 = vadd.f32 %v1405_v33, %v3445_v19 }
 0x216   : > { %1668 = vmatpush.msrb.mxu2 %v2571_v31  ;;  %1691 = vmatpush.msrb.mxu3 %v2573_v48  ;;  %v1419_v17 = vadd.f32 %v1418_v28, %v3447_v22 }
 0x217   : > { %v1407_v38 = vrot.slane %v1406_v27, 2 }
 0x218   : > { %1669 = vmatpush.msrb.mxu2 %v3605_v26  ;;  %1692 = vmatpush.msrb.mxu3 %v3609_v54  ;;  %v1420_v18 = vrot.slane %v1419_v17, 2  ;;  %v1432_v26 = vadd.f32 %v1431_v23, %v3473_v63 }
 0x21a   : > { %1670 = vmatpush.msrb.mxu2 %v3589_v21  ;;  %1693 = vmatpush.msrb.mxu3 %v3593_v44  ;;  %v1433_v43 = vrot.slane %v1432_v26, 2 }
 0x21c   : > { %1671 = vmatpush.msrb.mxu2 %v3565_v52  ;;  %1694 = vmatpush.msrb.mxu3 %v3573_v42  ;;  %v3674_v52 = vpop.permute.xlu1 %1506  ;;  %v1434_v48 = vadd.f32 %v1433_v43, %v1432_v26 }
 0x21d   : > { %2247 = vmatmul.msk.f32.gmra.mxu0 %vm915_vm2, %v3509_v6  ;;  %2249 = vmatmul.msk.f32.gmra.mxu1 %vm915_vm2, %v3509_v6 }
 0x21e   : > { %1672 = vmatpush.msrb.mxu2 %v3543_v53  ;;  %1695 = vmatpush.msrb.mxu3 %v3545_v61  ;;  %v1435_v56 = vrot.slane %v1434_v48, 1 }
 0x220   : > { %1673 = vmatpush.msrb.mxu2 %v3535_v3  ;;  %1696 = vmatpush.msrb.mxu3 %v3541_v4  ;;  %v3670_v3 = vpop.permute.xlu2 %1511  ;;  %v1408_v4 = vadd.f32 %v1407_v38, %v1406_v27  ;;  %v1436_v7 = vadd.f32 %v1435_v56, %v1434_v48 }
 0x221   : > { %2250 = vmatmul.msk.f32.vlgmr.msrb.gmra.mxu2 %vm915_vm2, %v3468_v9  ;;  %2252 = vmatmul.msk.f32.vlgmr.msrb.gmra.mxu3 %vm915_vm2, %v3468_v9  ;;  %v1421_v9 = vadd.f32 %v1420_v18, %v1419_v17 }
 0x222   : > { %v1409_v53 = vrot.slane %v1408_v4, 1  ;;  %v1722_v27 = vmul.f32 %v3684_v20, %v1436_v7 }
 0x223   : > { %v1422_v61 = vrot.slane %v1421_v9, 1 }
 0x224   : > { %v1410_v42 = vadd.f32 %v1409_v53, %v1408_v4 }
 0x225   : > { %v1423_v19 = vadd.f32 %v1422_v61, %v1421_v9 }
 0x226   : > { %v1720_v29 = vmul.f32 %v3684_v20, %v1410_v42 }
 0x228   : > { %v3676_v21 = vpop.permute.xlu2 %1705 }
 0x229   : > { %2251 = vmatmul.msk.f32.gmra.mxu2 %vm915_vm2, %v3509_v6  ;;  %2253 = vmatmul.msk.f32.gmra.mxu3 %vm915_vm2, %v3509_v6  ;;  %v1444_v6 = vrot.slane %v3478_v34, 4  ;;  %v1712_v46 = vmul.f32 %v3676_v21, %v1410_v42  ;;  %v1713_v24 = vmul.f32 %v3676_v21, %v1423_v19  ;;  %v1714_v12 = vmul.f32 %v3676_v21, %v1436_v7  ;;  %v3711_v7 = vld [vmem:[%s3834_s6] sm:$0xff] }
 0x22b   : > { %v1445_v51 = vadd.f32 %v1444_v6, %v3478_v34  ;;  %v1721_v34 = vmul.f32 %v3684_v20, %v1423_v19 }
 0x22d   : > { %v1446_v58 = vrot.slane %v1445_v51, 2 }
 0x22f   : > { %v1447_v37 = vadd.f32 %v1446_v58, %v1445_v51 }
 0x231   : > { %v1448_v62 = vrot.slane %v1447_v37, 1 }
 0x233   : > { %v1449_v1 = vadd.f32 %v1448_v62, %v1447_v37 }
 0x235   : > { %v1715_v60 = vmul.f32 %v3676_v21, %v1449_v1  ;;  %v1723_v4 = vmul.f32 %v3684_v20, %v1449_v1 }
 0x250   : > { %v1537_v11 = vpop.f32.mrf.mxu0 }
 0x251   : > { %v1560_v22 = vpop.f32.mrf.mxu1  ;;  %v1538_v44 = vadd.f32 %v1537_v11, %v3674_v52 }
 0x252   : > { %v1561_v54 = vadd.f32 %v1560_v22, %v3674_v52 }
 0x253   : > { %v1728_v47 = vsub.f32 %v1538_v44, %v1712_v46  ;;  %v1457_v46 = vrot.slane %v3619_v16, 4 }
 0x254   : > { %v1729_v13 = vsub.f32 %v1561_v54, %v1713_v24 }
 0x255   : > { %v1744_v35 = vmul.f32 1.442695, %v1728_v47  ;;  %v1470_v47 = vrot.slane %v3621_v45, 4 }
 0x256   : > { %v1746_v2 = vmul.f32 1.442695, %v1729_v13 }
 0x257   : > { %2586 = vpow2.f32 %v1744_v35 }
 0x258   : > { %v1540_v25 = vpop.f32.mrf.mxu0  ;;  %2588 = vpow2.f32 %v1746_v2  ;;  %v1483_v2 = vrot.slane %v3634_v15, 4 }
 0x259   : > { %v1541_v31 = vadd.f32 %v1540_v25, %v3670_v3  ;;  %v1563_v63 = vpop.f32.mrf.mxu1  ;;  %v1458_v25 = vadd.f32 %v1457_v46, %v3619_v16 }
 0x25a   : > { %v1564_v5 = vadd.f32 %v1563_v63, %v3670_v3  ;;  %v1484_v16 = vadd.f32 %v1483_v2, %v3634_v15 }
 0x25b   : > { %v1736_v49 = vsub.f32 %v1541_v31, %v1720_v29  ;;  %v1471_v31 = vadd.f32 %v1470_v47, %v3621_v45  ;;  %v1459_v29 = vrot.slane %v1458_v25, 2 }
 0x25c   : > { %v1737_v40 = vsub.f32 %v1564_v5, %v1721_v34  ;;  %v1485_v1 = vrot.slane %v1484_v16, 2 }
 0x25d   : > { %v1760_v55 = vmul.f32 1.442695, %v1736_v49  ;;  %v2587_v59 = vpop.eup %2586  ;;  %v1472_v63 = vrot.slane %v1471_v31, 2  ;;  %v1460_v35 = vadd.f32 %v1459_v29, %v1458_v25  ;;  %v1496_v49 = vrot.slane %v3637_v41, 4 }
 0x25e   : > { %v1762_v36 = vmul.f32 1.442695, %v1737_v40  ;;  %v2589_v50 = vpop.eup %2588 }
 0x25f   : > { %2590 = vpow2.f32 %v1760_v55  ;;  %v1473_v5 = vadd.f32 %v1472_v63, %v1471_v31  ;;  %v1461_v34 = vrot.slane %v1460_v35, 1  ;;  %v1497_v62 = vadd.f32 %v1496_v49, %v3637_v41 }
 0x260   : > { %2592 = vpow2.f32 %v1762_v36 }
 0x261   : > { %v1474_v48 = vrot.slane %v1473_v5, 1  ;;  %v1462_v37 = vadd.f32 %v1461_v34, %v1460_v35 }
 0x262   : > { %v1583_v32 = vpop.f32.mrf.mxu2 }
 0x263   : > { %v1606_v14 = vpop.f32.mrf.mxu3  ;;  %v1584_v8 = vadd.f32 %v1583_v32, %v3674_v52  ;;  %v1475_v36 = vadd.f32 %v1474_v48, %v1473_v5  ;;  %v1716_v32 = vmul.f32 %v3676_v21, %v1462_v37 }
 0x264   : > { %v1607_v10 = vadd.f32 %v1606_v14, %v3674_v52 }
 0x265   : > { %v2591_v0 = vpop.eup %2590  ;;  %v1730_v57 = vsub.f32 %v1584_v8, %v1714_v12  ;;  %v1717_v15 = vmul.f32 %v3676_v21, %v1475_v36 }
 0x266   : > { %v2593_v30 = vpop.eup %2592  ;;  %2594 = vtanh.f32 %v2591_v0  ;;  %v1731_v39 = vsub.f32 %v1607_v10, %v1715_v60  ;;  %v1724_v0 = vmul.f32 %v3684_v20, %v1462_v37 }
 0x267   : > { %2596 = vtanh.f32 %v2593_v30  ;;  %v1748_v38 = vmul.f32 1.442695, %v1730_v57  ;;  %v1725_v30 = vmul.f32 %v3684_v20, %v1475_v36  ;;  %v1486_v57 = vadd.f32 %v1485_v1, %v1484_v16 }
 0x268   : > { %2598 = vtanh.f32 %v2587_v59  ;;  %v1750_v53 = vmul.f32 1.442695, %v1731_v39  ;;  %v1498_v59 = vrot.slane %v1497_v62, 2 }
 0x269   : > { %2600 = vtanh.f32 %v2589_v50 }
 0x26a   : > { %v1586_v33 = vpop.f32.mrf.mxu2  ;;  %2602 = vpow2.f32 %v1748_v38 }
 0x26b   : > { %v1587_v28 = vadd.f32 %v1586_v33, %v3670_v3  ;;  %v1609_v17 = vpop.f32.mrf.mxu3  ;;  %2604 = vpow2.f32 %v1750_v53 }
 0x26c   : > { %v1610_v18 = vadd.f32 %v1609_v17, %v3670_v3  ;;  %v2595_v9 = vpop.eup %2594  ;;  %v3730_v17 = vld [vmem:[%s3834_s6 + $0x8] sm:$0xff] }
 0x26d   : > { %v1738_v61 = vsub.f32 %v1587_v28, %v1722_v27  ;;  %v2597_v23 = vpop.eup %2596  ;;  %1823 = vmatpush.msra.mxu0 %v2595_v9  ;;  %v1499_v27 = vadd.f32 %v1498_v59, %v1497_v62 }
 0x26e   : > { %v1739_v6 = vsub.f32 %v1610_v18, %v1723_v4  ;;  %v2599_v42 = vpop.eup %2598  ;;  %1846 = vmatpush.msra.mxu1 %v2597_v23  ;;  %v1487_v4 = vrot.slane %v1486_v57, 1 }
 0x26f   : > { %v1764_v11 = vmul.f32 1.442695, %v1738_v61  ;;  %v2601_v19 = vpop.eup %2600  ;;  %1824 = vmatpush.msra.mxu0 %v2599_v42  ;;  %v1500_v9 = vrot.slane %v1499_v27, 1 }
 0x270   : > { %v1766_v22 = vmul.f32 1.442695, %v1739_v6  ;;  %1847 = vmatpush.msra.mxu1 %v2601_v19  ;;  %v2603_v44 = vpop.eup %2602  ;;  %2254 = vmatmul.msk.f32.vlgmr.msra.gmra.mxu0 %vm1802_vm3, %v3711_v7  ;;  %v1488_v53 = vadd.f32 %v1487_v4, %v1486_v57  ;;  %v2718_v19 = vmov 2  }
 0x271   : > { %2606 = vpow2.f32 %v1764_v11  ;;  %v2605_v26 = vpop.eup %2604  ;;  %2256 = vmatmul.msk.f32.vlgmr.msra.gmra.mxu1 %vm1802_vm3, %v3711_v7  ;;  %v1501_v6 = vadd.f32 %v1500_v9, %v1499_v27  ;;  %2328 = vset.pattern.permute.xlu0 %v2718_v19 }
 0x272   : > { %2608 = vpow2.f32 %v1766_v22  ;;  %2329 = vset.pattern.permute.xlu1 %v2718_v19  ;;  %v1718_v46 = vmul.f32 %v3676_v21, %v1488_v53  ;;  %v1726_v31 = vmul.f32 %v3684_v20, %v1488_v53 }
 0x273   : > { %v1719_v47 = vmul.f32 %v3676_v21, %v1501_v6  ;;  %v1727_v63 = vmul.f32 %v3684_v20, %v1501_v6 }
 0x277   : > { %v2607_v54 = vpop.eup %2606 }
 0x278   : > { %v2609_v51 = vpop.eup %2608  ;;  %2610 = vtanh.f32 %v2607_v54  ;;  %2255 = vmatmul.msk.f32.gmra.mxu0 %vm1802_vm3, %v3730_v17  ;;  %v2651_v54 = vld [vmem:[%s3833_s5 + $0x8] sm:$0xff] }
 0x279   : > { %2612 = vtanh.f32 %v2609_v51  ;;  %2257 = vmatmul.msk.f32.gmra.mxu1 %vm1802_vm3, %v3730_v17  ;;  %1799 = vperm.xlu1 %2329, %v2651_v54  }
 0x27a   : > { %2614 = vtanh.f32 %v2603_v44 }
 0x27b   : > { %2616 = vtanh.f32 %v2605_v26  ;;  %v2650_v26 = vld [vmem:[%s3833_s5] sm:$0xff] }
 0x27c   : > { %1795 = vperm.xlu0 %2328, %v2650_v26  }
 0x27e   : > { %v2611_v24 = vpop.eup %2610 }
 0x27f   : > { %v2613_v43 = vpop.eup %2612  ;;  %1869 = vmatpush.msra.mxu2 %v2611_v24 }
 0x280   : > { %v2615_v13 = vpop.eup %2614  ;;  %1892 = vmatpush.msra.mxu3 %v2613_v43 }
 0x281   : > { %v2617_v58 = vpop.eup %2616  ;;  %1870 = vmatpush.msra.mxu2 %v2615_v13 }
 0x282   : > { %1893 = vmatpush.msra.mxu3 %v2617_v58  ;;  %2258 = vmatmul.msk.f32.vlgmr.msra.gmra.mxu2 %vm1802_vm3, %v3711_v7 }
 0x283   : > { %2260 = vmatmul.msk.f32.vlgmr.msra.gmra.mxu3 %vm1802_vm3, %v3711_v7 }
 0x28a   : > { %2259 = vmatmul.msk.f32.gmra.mxu2 %vm1802_vm3, %v3730_v17 }
 0x28b   : > { %2261 = vmatmul.msk.f32.gmra.mxu3 %vm1802_vm3, %v3730_v17 }
 0x292   : > { %v1629_v40 = vpop.f32.mrf.mxu0  ;;  %v1652_v55 = vpop.f32.mrf.mxu1 }
 0x293   : > { %v1630_v56 = vadd.f32 %v1629_v40, %v3674_v52  ;;  %v1653_v45 = vadd.f32 %v1652_v55, %v3674_v52 }
 0x295   : > { %v1732_v41 = vsub.f32 %v1630_v56, %v1716_v32  ;;  %v1733_v14 = vsub.f32 %v1653_v45, %v1717_v15 }
 0x297   : > { %v1752_v60 = vmul.f32 1.442695, %v1732_v41  ;;  %v1754_v39 = vmul.f32 1.442695, %v1733_v14 }
 0x299   : > { %2618 = vpow2.f32 %v1752_v60 }
 0x29a   : > { %v1632_v8 = vpop.f32.mrf.mxu0  ;;  %v1655_v50 = vpop.f32.mrf.mxu1  ;;  %2620 = vpow2.f32 %v1754_v39 }
 0x29b   : > { %v1633_v10 = vadd.f32 %v1632_v8, %v3670_v3  ;;  %v1656_v12 = vadd.f32 %v1655_v50, %v3670_v3 }
 0x29d   : > { %v1740_v33 = vsub.f32 %v1633_v10, %v1724_v0  ;;  %v1741_v28 = vsub.f32 %v1656_v12, %v1725_v30 }
 0x29f   : > { %v1768_v38 = vmul.f32 1.442695, %v1740_v33  ;;  %v1770_v18 = vmul.f32 1.442695, %v1741_v28  ;;  %v2619_v42 = vpop.eup %2618 }
 0x2a0   : > { %v2621_v22 = vpop.eup %2620 }
 0x2a1   : > { %2622 = vpow2.f32 %v1768_v38 }
 0x2a2   : > { %2624 = vpow2.f32 %v1770_v18 }
 0x2a4   : > { %v1675_v61 = vpop.f32.mrf.mxu2  ;;  %v1698_v23 = vpop.f32.mrf.mxu3 }
 0x2a5   : > { %v1676_v11 = vadd.f32 %v1675_v61, %v3674_v52  ;;  %v1699_v44 = vadd.f32 %v1698_v23, %v3674_v52 }
 0x2a7   : > { %v2623_v51 = vpop.eup %2622  ;;  %v1734_v43 = vsub.f32 %v1676_v11, %v1718_v46  ;;  %v1735_v52 = vsub.f32 %v1699_v44, %v1719_v47 }
 0x2a8   : > { %v2625_v24 = vpop.eup %2624  ;;  %2626 = vtanh.f32 %v2623_v51 }
 0x2a9   : > { %2628 = vtanh.f32 %v2625_v24  ;;  %v1756_v35 = vmul.f32 1.442695, %v1734_v43  ;;  %v1758_v34 = vmul.f32 1.442695, %v1735_v52 }
 0x2aa   : > { %2630 = vtanh.f32 %v2619_v42 }
 0x2ab   : > { %2632 = vtanh.f32 %v2621_v22 }
 0x2ac   : > { %v1678_v13 = vpop.f32.mrf.mxu2  ;;  %v1701_v58 = vpop.f32.mrf.mxu3  ;;  %2634 = vpow2.f32 %v1756_v35 }
 0x2ad   : > { %v1679_v25 = vadd.f32 %v1678_v13, %v3670_v3  ;;  %v1702_v29 = vadd.f32 %v1701_v58, %v3670_v3  ;;  %2636 = vpow2.f32 %v1758_v34 }
 0x2ae   : > { %v2627_v5 = vpop.eup %2626 }
 0x2af   : > { %v1742_v48 = vsub.f32 %v1679_v25, %v1726_v31  ;;  %v1743_v21 = vsub.f32 %v1702_v29, %v1727_v63  ;;  %v2629_v2 = vpop.eup %2628  ;;  %1915 = vmatpush.msrb.mxu0 %v2627_v5 }
 0x2b0   : > { %v2631_v49 = vpop.eup %2630  ;;  %1938 = vmatpush.msrb.mxu1 %v2629_v2 }
 0x2b1   : > { %v1772_v37 = vmul.f32 1.442695, %v1742_v48  ;;  %v1774_v40 = vmul.f32 1.442695, %v1743_v21  ;;  %v2633_v55 = vpop.eup %2632  ;;  %1916 = vmatpush.msrb.mxu0 %v2631_v49 }
 0x2b2   : > { %1939 = vmatpush.msrb.mxu1 %v2633_v55  ;;  %2262 = vmatmul.msk.f32.vlgmr.msrb.gmra.mxu0 %vm1802_vm3, %v3711_v7  ;;  %v2635_v3 = vpop.eup %2634 }
 0x2b3   : > { %2638 = vpow2.f32 %v1772_v37  ;;  %2264 = vmatmul.msk.f32.vlgmr.msrb.gmra.mxu1 %vm1802_vm3, %v3711_v7  ;;  %v2637_v20 = vpop.eup %2636 }
 0x2b4   : > { %2640 = vpow2.f32 %v1774_v40 }
 0x2b9   : > { %v2639_v36 = vpop.eup %2638 }
 0x2ba   : > { %v2641_v56 = vpop.eup %2640  ;;  %2642 = vtanh.f32 %v2639_v36  ;;  %2263 = vmatmul.msk.f32.gmra.mxu0 %vm1802_vm3, %v3730_v17 }
 0x2bb   : > { %2644 = vtanh.f32 %v2641_v56  ;;  %2265 = vmatmul.msk.f32.gmra.mxu1 %vm1802_vm3, %v3730_v17 }
 0x2bc   : > { %2646 = vtanh.f32 %v2635_v3 }
 0x2bd   : > { %2648 = vtanh.f32 %v2637_v20 }
 0x2c0   : > { %v2643_v16 = vpop.eup %2642 }
 0x2c1   : > { %v2645_v45 = vpop.eup %2644  ;;  %1961 = vmatpush.msrb.mxu2 %v2643_v16 }
 0x2c2   : > { %v2647_v62 = vpop.eup %2646  ;;  %1984 = vmatpush.msrb.mxu3 %v2645_v45 }
 0x2c3   : > { %v2649_v32 = vpop.eup %2648  ;;  %1962 = vmatpush.msrb.mxu2 %v2647_v62 }
 0x2c4   : > { %1985 = vmatpush.msrb.mxu3 %v2649_v32  ;;  %2266 = vmatmul.msk.f32.vlgmr.msrb.gmra.mxu2 %vm1802_vm3, %v3711_v7 }
 0x2c5   : > { %2268 = vmatmul.msk.f32.vlgmr.msrb.gmra.mxu3 %vm1802_vm3, %v3711_v7 }
 0x2cc   : > { %2267 = vmatmul.msk.f32.gmra.mxu2 %vm1802_vm3, %v3730_v17 }
 0x2cd   : > { %2269 = vmatmul.msk.f32.gmra.mxu3 %vm1802_vm3, %v3730_v17 }
 0x2eb   : > { %v1800_v0 = vpop.permute.xlu1 %1799 }
 0x2ed   : > { %v1826_v15 = vpop.f32.mrf.mxu0 }
 0x2ee   : > { %v1849_v41 = vpop.f32.mrf.mxu1  ;;  %v1796_v1 = vpop.permute.xlu0 %1795 }
 0x2ef   : > { %v1827_v59 = vadd.f32 %v1826_v15, %v1796_v1  ;;  %v1850_v8 = vadd.f32 %v1849_v41, %v1796_v1 }
 0x2f1   : > { %1993 = vst [vmem:[%s3771_s13] sm:$0xff] %v1827_v59 }
 0x2f2   : > { %1994 = vst [vmem:[%s3771_s13 + $0x8] sm:$0xff] %v1850_v8 }
 0x2f5   : > { %v1829_v7 = vpop.f32.mrf.mxu0 }
 0x2f6   : > { %v1852_v30 = vpop.f32.mrf.mxu1  ;;  %v1830_v60 = vadd.f32 %v1829_v7, %v1800_v0 }
 0x2f7   : > { %v1853_v57 = vadd.f32 %v1852_v30, %v1800_v0 }
 0x2f8   : > { %2001 = vst [vmem:[%s3771_s13 + $0x40] sm:$0xff] %v1830_v60 }
 0x2f9   : > { %2002 = vst [vmem:[%s3771_s13 + $0x48] sm:$0xff] %v1853_v57 }
 0x305   : > { %v1872_v14 = vpop.f32.mrf.mxu2 }
 0x306   : > { %v1873_v50 = vadd.f32 %v1872_v14, %v1796_v1  ;;  %v1895_v10 = vpop.f32.mrf.mxu3 }
 0x307   : > { %v1896_v12 = vadd.f32 %v1895_v10, %v1796_v1 }
 0x308   : > { %1995 = vst [vmem:[%s3771_s13 + $0x10] sm:$0xff] %v1873_v50 }
 0x309   : > { %1996 = vst [vmem:[%s3771_s13 + $0x18] sm:$0xff] %v1896_v12 }
 0x30d   : > { %v1875_v39 = vpop.f32.mrf.mxu2 }
 0x30e   : > { %v1876_v33 = vadd.f32 %v1875_v39, %v1800_v0  ;;  %v1898_v28 = vpop.f32.mrf.mxu3 }
 0x30f   : > { %v1899_v27 = vadd.f32 %v1898_v28, %v1800_v0 }
 0x310   : > { %2003 = vst [vmem:[%s3771_s13 + $0x50] sm:$0xff] %v1876_v33 }
 0x311   : > { %2004 = vst [vmem:[%s3771_s13 + $0x58] sm:$0xff] %v1899_v27 }
 0x32f   : > { %v1918_v17 = vpop.f32.mrf.mxu0 }
 0x330   : > { %v1919_v38 = vadd.f32 %v1918_v17, %v1796_v1  ;;  %v1941_v18 = vpop.f32.mrf.mxu1 }
 0x331   : > { %v1942_v4 = vadd.f32 %v1941_v18, %v1796_v1 }
 0x332   : > { %1997 = vst [vmem:[%s3771_s13 + $0x20] sm:$0xff] %v1919_v38 }
 0x333   : > { %1998 = vst [vmem:[%s3771_s13 + $0x28] sm:$0xff] %v1942_v4 }
 0x337   : > { %v1921_v9 = vpop.f32.mrf.mxu0 }
 0x338   : > { %v1922_v53 = vadd.f32 %v1921_v9, %v1800_v0  ;;  %v1944_v61 = vpop.f32.mrf.mxu1 }
 0x339   : > { %v1945_v23 = vadd.f32 %v1944_v61, %v1800_v0 }
 0x33a   : > { %2005 = vst [vmem:[%s3771_s13 + $0x60] sm:$0xff] %v1922_v53 }
 0x33b   : > { %2006 = vst [vmem:[%s3771_s13 + $0x68] sm:$0xff] %v1945_v23 }
 0x347   : > { %v1964_v6 = vpop.f32.mrf.mxu2 }
 0x348   : > { %v1965_v42 = vadd.f32 %v1964_v6, %v1796_v1  ;;  %v1987_v11 = vpop.f32.mrf.mxu3 }
 0x349   : > { %v1988_v19 = vadd.f32 %v1987_v11, %v1796_v1 }
 0x34a   : > { %1999 = vst [vmem:[%s3771_s13 + $0x30] sm:$0xff] %v1965_v42 }
 0x34b   : > { %2000 = vst [vmem:[%s3771_s13 + $0x38] sm:$0xff] %v1988_v19 }
 0x34f   : > { %v1967_v22 = vpop.f32.mrf.mxu2 }
 0x350   : > { %v1968_v44 = vadd.f32 %v1967_v22, %v1800_v0  ;;  %v1990_v26 = vpop.f32.mrf.mxu3 }
 0x351   : > { %v1991_v54 = vadd.f32 %v1990_v26, %v1800_v0 }
 0x352   : > { %2007 = vst [vmem:[%s3771_s13 + $0x70] sm:$0xff] %v1968_v44 }
 0x353   : > { %2008 = vst [vmem:[%s3771_s13 + $0x78] sm:$0xff] %v1991_v54 }
 0x354   : > { %2679 = shalt.err (!%p2676_p5)
}
 0x355   : > { %s2719_s20 = smov 1024   ;;  %s2720_s13 = smov 2048  }
 0x356   : > { %s2721_s14 = smov 64  }
 0x357   : > { %2277 = dma.vmem_to_hbm [thread:$0]  (%p2800_p6), %s2023_s17, 2048, %s2025_s18, %s2010_s28, %s2719_s20, %s2720_s13, %s2721_s14  }
 0x358 PF: > { %s2039_s15 = sand.u32 1, %s2702_s24   ;;  %p2280_p7 = pnand %p2095_p9, %p2804_p8 }
 0x359   : > { %s2040_s16 = scalar_lea.sflag [#allocation4], %s2039_s15 }
 0x35a   : > { %p2281_p10 = pneg %p2280_p7 }
 0x35c   : > { %2697 = dma.done.wait (%p2281_p10), %s2040_s16, 2048  }
 0x35d   : > { %2699 = vsyncadd (%p2281_p10), %s2040_s16, 4294965248  ;;  %p17_p11 = scmp.ge.s32.totalorder %s2785_s30, 4   ;;  %s3838_s24 = smov %s2706_s25 }
 0x35e   : > { %s3839_s25 = smov %s2710_s26  ;;  %s3840_s26 = smov %s2798_s10 }
 0x35f   : > { %s3841_s27 = smov %s2785_s30  ;;  %19 = sbr.rel (!%p17_p11) target bundleno = 3 (0x3), region = 111 }
 0x364   :  { %2046 = vsyncpa [#allocation4], 1 }
 0x365   :  { %2048 = vsyncpa [#allocation4 + $0x1], 1 }

</bundles_post_ra>
